<compile_context>
chip_gen: v7x
topology: tpu7x:2x2x1
jax: 0.10.0
libtpu: 0.0.40
codegen_flags: <defaults>
</compile_context>

<pallas_src>
import math

import jax
import jax.numpy as jnp
from jax.experimental import pallas as pl
from jax.experimental.pallas import tpu as pltpu

NEG_SLOPE = 0.01  # torch.nn.LeakyReLU default negative_slope


def _leaky_relu(v):
    return jnp.where(v >= 0, v, NEG_SLOPE * v)


# ----------------------------------------------------------------------------- kernel
def clip_adapter_kernel(
    x_ref,        # (Bb, N, C)  f32 input slab for this batch block
    freq_ref,     # (Bb, 1, C)  f32 precomputed FFT magnitude stats
    sa_ref,       # (16,)       f32 SMEM: [avg taps(7), max taps(7), bias, pad]
    ca_w1_ref,    # (C, Cr)     f32 ChannelAttention fc weights (in x out)
    ca_w2_ref,    # (Cr, C)     f32
    fa_w1_ref,    # (C, Cr)     f32 FrequencyAttention fc weights
    fa_w2_ref,    # (Cr, C)     f32
    fc1_w_ref,    # (C, Bn)     bf16
    fc2_w_ref,    # (Bn, C)     bf16
    adapter_x_ref,  # out (Bb, N, Bn) f32
    y_ref,          # out (Bb, N, C)  f32
):
    bb, n, c = x_ref.shape
    bn = fc1_w_ref.shape[1]
    m = bb * n

    x3 = x_ref[...]                                            # (Bb, N, C) f32

    # --- ChannelAttention gate, vectorized over the batch block (one stacked MLP).
    avg_c = jnp.mean(x3, axis=1)                               # (Bb, C)
    max_c = jnp.max(x3, axis=1)                                # (Bb, C)
    pooled = jnp.concatenate([avg_c, max_c], axis=0)           # (2*Bb, C)
    hid = jnp.maximum(
        jnp.dot(pooled, ca_w1_ref[...], preferred_element_type=jnp.float32), 0.0)
    mlp = jnp.dot(hid, ca_w2_ref[...], preferred_element_type=jnp.float32)  # (2*Bb, C)
    ca_gate = jax.nn.sigmoid(mlp[:bb] + mlp[bb:])              # (Bb, C)
    ca3 = ca_gate[:, None, :] * x3                             # (Bb, N, C)

    # --- SpatialAttention: banded 7-tap conv batched over the block.
    # Transposed band matrices (input-pos x output-pos) rebuilt in-kernel from SMEM
    # scalars, so conv = stats @ band is a single (Bb, N) @ (N, N) matmul per stat.
    row_i = jax.lax.broadcasted_iota(jnp.int32, (n, n), 0)     # input position
    col_i = jax.lax.broadcasted_iota(jnp.int32, (n, n), 1)     # output position
    diff = row_i - col_i                                       # tap offset in [-3, 3]
    band_avg_t = jnp.zeros((n, n), jnp.float32)
    band_max_t = jnp.zeros((n, n), jnp.float32)
    for k in range(7):
        sel = (diff == (k - 3)).astype(jnp.float32)
        band_avg_t = band_avg_t + sa_ref[k] * sel
        band_max_t = band_max_t + sa_ref[7 + k] * sel
    sa_bias = sa_ref[14]

    avg_s = jnp.mean(ca3, axis=2)                              # (Bb, N)
    max_s = jnp.max(ca3, axis=2)                               # (Bb, N)
    conv = (jnp.dot(avg_s, band_avg_t, preferred_element_type=jnp.float32)
            + jnp.dot(max_s, band_max_t, preferred_element_type=jnp.float32)
            + sa_bias)                                         # (Bb, N)
    sa3 = jax.nn.sigmoid(conv)[:, :, None] * ca3               # (Bb, N, C)

    # --- FrequencyAttention gate (precomputed FFT stats), vectorized over the block.
    freq = freq_ref[...].reshape(bb, c)                        # (Bb, C)
    fh = jnp.maximum(
        jnp.dot(freq, fa_w1_ref[...], preferred_element_type=jnp.float32), 0.0)
    fa_gate = jax.nn.sigmoid(
        jnp.dot(fh, fa_w2_ref[...], preferred_element_type=jnp.float32))    # (Bb, C)
    fa3 = fa_gate[:, None, :] * x3                             # (Bb, N, C)

    # --- fused fc1: one (4*Bb*N, C) @ (C, Bn) bf16 MXU matmul for all four branches.
    ca2 = ca3.reshape(m, c)
    sa2 = sa3.reshape(m, c)
    fa2 = fa3.reshape(m, c)
    rows = jnp.concatenate(
        [x3.reshape(m, c).astype(jnp.bfloat16), ca2.astype(jnp.bfloat16),
         sa2.astype(jnp.bfloat16), fa2.astype(jnp.bfloat16)], axis=0)        # bf16
    h1 = _leaky_relu(jnp.dot(rows, fc1_w_ref[...],
                             preferred_element_type=jnp.float32))            # (4m, Bn)
    adapter_x = (0.4 * h1[:m] + 0.2 * h1[m:2 * m]
                 + 0.2 * h1[2 * m:3 * m] + 0.2 * h1[3 * m:])                 # (m, Bn)

    adapter_y = _leaky_relu(jnp.dot(adapter_x.astype(jnp.bfloat16), fc2_w_ref[...],
                                    preferred_element_type=jnp.float32))     # (m, C)
    y2 = 0.3 * adapter_y + 0.2 * ca2 + 0.2 * sa2 + 0.3 * fa2

    adapter_x_ref[...] = adapter_x.reshape(bb, n, bn)
    y_ref[...] = y2.reshape(bb, n, c)


# ------------------------------------------------------------------------ block sizing
def _choose_block_b(B, N, C, Bn, prefer_two_cores):
    # m = block_b*N must be a multiple of 8 so the fused-fc1 output splits land on
    # sublane-tile boundaries (free views, no re-layout copies).
    align = 8 // math.gcd(N, 8)
    # Rough per-activation-row VMEM estimate: double-buffered x/y/adapter_x blocks,
    # the ca/sa/fa intermediates, the bf16 `rows` slab and the f32 h1 slab.
    bytes_per_row = 48 * (C + Bn)
    budget = 20 * 1024 * 1024                     # fits every generation's scoped VMEM
    cap = budget // (bytes_per_row * N)
    cap = max(align, (cap // align) * align)
    if prefer_two_cores and B > align:
        target = -(-B // 2)                       # v7x: split the batch over both TCs
    else:
        target = B                                # single TC: one big block, grid = 1
    target = max(align, -(-target // align) * align)
    return int(min(cap, target))


# ---------------------------------------------------------------------------- wrapper
def clip_adapter_pallas(x, params, block_b=None):
    B, N, C = x.shape
    Bn = params["fc1_w"].shape[1]
    Cr = params["ca_w1"].shape[1]
    x = x.astype(jnp.float32)

    # TODO(synk): torch.fft.fft2 has no Pallas TPU lowering; FFT magnitude stats are JAX glue.
    xt = jnp.transpose(x, (0, 2, 1))                              # (B, C, N)
    mag = jnp.abs(jnp.fft.fft2(xt))                               # (B, C, N)
    freq_info = 0.5 * (jnp.mean(mag, axis=-1) + jnp.max(mag, axis=-1))   # (B, C)
    freq_info = freq_info[:, None, :].astype(jnp.float32)         # (B, 1, C)

    try:
        kind = jax.devices()[0].device_kind.lower()
    except Exception:
        kind = ""
    two_cores = "v7" in kind                                      # v7x: 2 TCs/chip

    if block_b is None:
        block_b = _choose_block_b(B, N, C, Bn, two_cores)

    grid = -(-B // block_b)
    if two_cores and grid > 1 and grid % 2:
        grid += 1                                                 # keep both TCs balanced
    B_pad = grid * block_b
    if B_pad != B:
        # Pad the batch (instead of shrinking the tile) so block_b stays aligned.
        x_p = jnp.pad(x, ((0, B_pad - B), (0, 0), (0, 0)))
        freq_p = jnp.pad(freq_info, ((0, B_pad - B), (0, 0), (0, 0)))
    else:
        x_p, freq_p = x, freq_info

    # Conv1d(2, 1, k=7, pad=3) taps + bias as 15 scalars for SMEM (padded to 16).
    sa_params = jnp.concatenate([
        params["sa_conv_w"].reshape(-1).astype(jnp.float32),      # [avg taps, max taps]
        params["sa_conv_b"].reshape(-1).astype(jnp.float32),      # bias
        jnp.zeros((1,), jnp.float32),
    ])                                                            # (16,)

    def wspec(shape):
        nd = len(shape)

        def idx(b):
            return (0,) * nd

        return pl.BlockSpec(shape, idx)

    # Explicit scoped-VMEM limit derived from the chosen block (sized for v7x's 64 MiB).
    est = (48 * (C + Bn) * block_b * N        # activations / intermediates
           + 2 * 2 * C * Bn                   # fc1 + fc2 bf16 weights
           + 4 * 4 * C * Cr)                  # tiny attention MLP weights (f32)
    vmem_limit = int(min(56 * 1024 * 1024, max(32 * 1024 * 1024, 2 * est)))

    grid_spec = pltpu.PrefetchScalarGridSpec(
        num_scalar_prefetch=0,
        grid=(grid,),
        in_specs=[
            pl.BlockSpec((block_b, N, C), lambda b: (b, 0, 0)),       # x
            pl.BlockSpec((block_b, 1, C), lambda b: (b, 0, 0)),       # freq_info
            pl.BlockSpec(memory_space=pltpu.MemorySpace.SMEM),        # conv taps + bias
            wspec((C, Cr)), wspec((Cr, C)),                           # channel-attn fc (f32)
            wspec((C, Cr)), wspec((Cr, C)),                           # frequency-attn fc (f32)
            wspec((C, Bn)), wspec((Bn, C)),                           # fc1 / fc2 (bf16)
        ],
        out_specs=[
            pl.BlockSpec((block_b, N, Bn), lambda b: (b, 0, 0)),
            pl.BlockSpec((block_b, N, C), lambda b: (b, 0, 0)),
        ],
    )

    adapter_x, y = pl.pallas_call(
        clip_adapter_kernel,
        out_shape=(jax.ShapeDtypeStruct((B_pad, N, Bn), jnp.float32),
                   jax.ShapeDtypeStruct((B_pad, N, C), jnp.float32)),
        grid_spec=grid_spec,
        compiler_params=pltpu.CompilerParams(
            dimension_semantics=("parallel",),
            vmem_limit_bytes=vmem_limit),
    )(x_p, freq_p, sa_params,
      params["ca_w1"].astype(jnp.float32), params["ca_w2"].astype(jnp.float32),
      params["fa_w1"].astype(jnp.float32), params["fa_w2"].astype(jnp.float32),
      params["fc1_w"].astype(jnp.bfloat16), params["fc2_w"].astype(jnp.bfloat16))

    if B_pad != B:
        adapter_x, y = adapter_x[:B], y[:B]
    return adapter_x, y


# ----------------------------------------------------------------- pure-JAX reference
def clip_adapter_ref(x, params):
    x = x.astype(jnp.float32)
    # ChannelAttention
    avg_c = jnp.mean(x, axis=1)
    max_c = jnp.max(x, axis=1)

    def ca_fc(v):
        return jnp.maximum(v @ params["ca_w1"], 0.0) @ params["ca_w2"]

    ca_gate = jax.nn.sigmoid(ca_fc(avg_c) + ca_fc(max_c))[:, None, :]
    ca_out = ca_gate * x
    # SpatialAttention
    avg_s = jnp.mean(ca_out, axis=2)
    max_s = jnp.max(ca_out, axis=2)
    inp = jnp.stack([avg_s, max_s], axis=1)                    # (B, 2, N)
    conv = jax.lax.conv_general_dilated(
        inp, params["sa_conv_w"], window_strides=(1,), padding=((3, 3),),
        dimension_numbers=("NCH", "OIH", "NCH"))
    conv = conv + params["sa_conv_b"].reshape(1, 1, 1)
    sa_gate = jnp.transpose(jax.nn.sigmoid(conv), (0, 2, 1))   # (B, N, 1)
    sa_out = sa_gate * ca_out
    # FrequencyAttention
    mag = jnp.abs(jnp.fft.fft2(jnp.transpose(x, (0, 2, 1))))
    freq_info = 0.5 * (jnp.mean(mag, axis=-1) + jnp.max(mag, axis=-1))
    fa_gate = jax.nn.sigmoid(
        jnp.maximum(freq_info @ params["fa_w1"], 0.0) @ params["fa_w2"])[:, None, :]
    fa_out = fa_gate * x

    def fc1(v):
        return _leaky_relu(v @ params["fc1_w"])

    adapter_x = 0.4 * fc1(x) + 0.2 * fc1(ca_out) + 0.2 * fc1(sa_out) + 0.2 * fc1(fa_out)
    adapter_y = _leaky_relu(adapter_x @ params["fc2_w"])
    y = 0.3 * adapter_y + 0.2 * ca_out + 0.2 * sa_out + 0.3 * fa_out
    return adapter_x, y


def init_params(key, c_in, bottleneck):
    cr = c_in // 16
    keys = jax.random.split(key, 8)

    def w(k, shape, fan_in):
        return (jax.random.normal(k, shape, dtype=jnp.float32) / jnp.sqrt(float(fan_in)))

    return {
        "ca_w1": w(keys[0], (c_in, cr), c_in),
        "ca_w2": w(keys[1], (cr, c_in), cr),
        "fa_w1": w(keys[2], (c_in, cr), c_in),
        "fa_w2": w(keys[3], (cr, c_in), cr),
        "sa_conv_w": w(keys[4], (1, 2, 7), 14),
        "sa_conv_b": w(keys[5], (1,), 14),
        "fc1_w": w(keys[6], (c_in, bottleneck), c_in),
        "fc2_w": w(keys[7], (bottleneck, c_in), bottleneck),
    }


if __name__ == "__main__":
    B, N, C, BOTTLENECK = 4, 16, 128, 128  # small; c_in must be >= 16 (reduction ratio)
    root = jax.random.PRNGKey(0)
    kx, kp = jax.random.split(root)
    x = jax.random.normal(kx, (B, N, C), dtype=jnp.float32)
    params = init_params(kp, C, BOTTLENECK)

    adapter_x, y = clip_adapter_pallas(x, params)
    jax.block_until_ready((adapter_x, y))

    ref_ax, ref_y = clip_adapter_ref(x, params)
    assert adapter_x.shape == (B, N, BOTTLENECK) and y.shape == (B, N, C)
    # Kernel uses bf16 fc1/fc2 MXU matmuls (f32 accumulation) vs. the all-f32 reference.
    assert jnp.allclose(adapter_x, ref_ax, atol=2e-2, rtol=2e-2)
    assert jnp.allclose(y, ref_y, atol=2e-2, rtol=2e-2)
    print("KERNEL_OK")
</pallas_src>

<mosaic_0001>
module attributes {stable_mosaic.version = 11 : i64} {
  func.func @clip_adapter_kernel(%arg0: i32, %arg1: memref<4x16x128xf32, #tpu.memory_space<vmem>>, %arg2: memref<4x1x128xf32, #tpu.memory_space<vmem>>, %arg3: memref<16xf32, #tpu.memory_space<smem>>, %arg4: memref<128x8xf32, #tpu.memory_space<vmem>>, %arg5: memref<8x128xf32, #tpu.memory_space<vmem>>, %arg6: memref<128x8xf32, #tpu.memory_space<vmem>>, %arg7: memref<8x128xf32, #tpu.memory_space<vmem>>, %arg8: memref<128x128xbf16, #tpu.memory_space<vmem>>, %arg9: memref<128x128xbf16, #tpu.memory_space<vmem>>, %arg10: memref<4x16x128xf32, #tpu.memory_space<vmem>>, %arg11: memref<4x16x128xf32, #tpu.memory_space<vmem>>) attributes {dimension_semantics = [#tpu.dimension_semantics<parallel>], iteration_bounds = array<i64: 1>, scalar_prefetch = 0 : i64, scratch_operands = 0 : i64, tpu.core_type = #tpu.core_type<tc>, window_params = [{transform_indices = @transform_0, window_bounds = array<i64: 4, 16, 128>}, {transform_indices = @transform_1, window_bounds = array<i64: 4, 1, 128>}, {transform_indices = @transform_2, window_bounds = array<i64: 16>}, {pipeline_mode = #tpu.pipeline_mode<synchronous>, transform_indices = @transform_3, window_bounds = array<i64: 128, 8>}, {pipeline_mode = #tpu.pipeline_mode<synchronous>, transform_indices = @transform_4, window_bounds = array<i64: 8, 128>}, {pipeline_mode = #tpu.pipeline_mode<synchronous>, transform_indices = @transform_5, window_bounds = array<i64: 128, 8>}, {pipeline_mode = #tpu.pipeline_mode<synchronous>, transform_indices = @transform_6, window_bounds = array<i64: 8, 128>}, {pipeline_mode = #tpu.pipeline_mode<synchronous>, transform_indices = @transform_7, window_bounds = array<i64: 128, 128>}, {pipeline_mode = #tpu.pipeline_mode<synchronous>, transform_indices = @transform_8, window_bounds = array<i64: 128, 128>}, {transform_indices = @transform_9, window_bounds = array<i64: 4, 16, 128>}, {transform_indices = @transform_10, window_bounds = array<i64: 4, 16, 128>}]} {
    %c0 = arith.constant 0 : index
    %c0_0 = arith.constant 0 : index
    %c0_1 = arith.constant 0 : index
    %0 = vector.load %arg1[%c0, %c0_0, %c0_1] : memref<4x16x128xf32, #tpu.memory_space<vmem>>, vector<4x16x128xf32>
    %cst = arith.constant dense<0.000000e+00> : vector<4x128xf32>
    %1 = vector.multi_reduction <add>, %0, %cst [1] : vector<4x16x128xf32> to vector<4x128xf32>
    %cst_2 = arith.constant 1.600000e+01 : f32
    %2 = vector.broadcast %cst_2 : f32 to vector<4x128xf32>
    %3 = arith.divf %1, %2 : vector<4x128xf32>
    %cst_3 = arith.constant dense<0xFF800000> : vector<4x128xf32>
    %4 = vector.multi_reduction <maximumf>, %0, %cst_3 [1] : vector<4x16x128xf32> to vector<4x128xf32>
    %5 = tpu.concatenate %3, %4 in 0 : vector<4x128xf32>, vector<4x128xf32> -> vector<8x128xf32>
    %c0_4 = arith.constant 0 : index
    %c0_5 = arith.constant 0 : index
    %6 = vector.load %arg4[%c0_4, %c0_5] : memref<128x8xf32, #tpu.memory_space<vmem>>, vector<128x8xf32>
    %cst_6 = arith.constant dense<0.000000e+00> : vector<8x8xf32>
    %7 = tpu.matmul %5, %6, %cst_6 {dimension_numbers = #tpu.dot_dimension_numbers<[1], [0], [0], [1], [0, 0, 1, 1], [], []>} : vector<8x128xf32>, vector<128x8xf32>, vector<8x8xf32> -> vector<8x8xf32>
    %cst_7 = arith.constant 0.000000e+00 : f32
    %8 = vector.broadcast %cst_7 : f32 to vector<8x8xf32>
    %9 = arith.maximumf %7, %8 : vector<8x8xf32>
    %c0_8 = arith.constant 0 : index
    %c0_9 = arith.constant 0 : index
    %10 = vector.load %arg5[%c0_8, %c0_9] : memref<8x128xf32, #tpu.memory_space<vmem>>, vector<8x128xf32>
    %cst_10 = arith.constant dense<0.000000e+00> : vector<8x128xf32>
    %11 = tpu.matmul %9, %10, %cst_10 {dimension_numbers = #tpu.dot_dimension_numbers<[1], [0], [0], [1], [0, 0, 1, 1], [], []>} : vector<8x8xf32>, vector<8x128xf32>, vector<8x128xf32> -> vector<8x128xf32>
    %12 = vector.extract_strided_slice %11 {offsets = [0, 0], sizes = [4, 128], strides = [1, 1]} : vector<8x128xf32> to vector<4x128xf32>
    %13 = vector.extract_strided_slice %11 {offsets = [4, 0], sizes = [4, 128], strides = [1, 1]} : vector<8x128xf32> to vector<4x128xf32>
    %14 = arith.addf %12, %13 : vector<4x128xf32>
    %15 = arith.negf %14 : vector<4x128xf32>
    %16 = math.exp %15 : vector<4x128xf32>
    %cst_11 = arith.constant 1.000000e+00 : f32
    %17 = vector.broadcast %cst_11 : f32 to vector<4x128xf32>
    %18 = arith.addf %17, %16 : vector<4x128xf32>
    %19 = arith.divf %17, %18 : vector<4x128xf32>
    %20 = vector.shape_cast %19 : vector<4x128xf32> to vector<4x1x128xf32>
    %21 = vector.broadcast %20 : vector<4x1x128xf32> to vector<4x16x128xf32>
    %22 = arith.mulf %21, %0 : vector<4x16x128xf32>
    %23 = tpu.iota {dimensions = array<i32: 0>} : vector<16x16xi32>
    %24 = tpu.iota {dimensions = array<i32: 1>} : vector<16x16xi32>
    %25 = arith.subi %23, %24 : vector<16x16xi32>
    %cst_12 = arith.constant 0.000000e+00 : f32
    %26 = vector.broadcast %cst_12 : f32 to vector<16x16xf32>
    %cst_13 = arith.constant 0.000000e+00 : f32
    %27 = vector.broadcast %cst_13 : f32 to vector<16x16xf32>
    %c-3_i32 = arith.constant -3 : i32
    %28 = vector.broadcast %c-3_i32 : i32 to vector<16x16xi32>
    %29 = arith.cmpi eq, %25, %28 : vector<16x16xi32>
    %30 = arith.extui %29 : vector<16x16xi1> to vector<16x16xi32>
    %31 = arith.sitofp %30 : vector<16x16xi32> to vector<16x16xf32>
    %c0_14 = arith.constant 0 : index
    %32 = memref.load %arg3[%c0_14] : memref<16xf32, #tpu.memory_space<smem>>
    %33 = vector.broadcast %32 : f32 to vector<16x16xf32>
    %34 = arith.mulf %33, %31 : vector<16x16xf32>
    %35 = arith.addf %26, %34 : vector<16x16xf32>
    %c7 = arith.constant 7 : index
    %36 = memref.load %arg3[%c7] : memref<16xf32, #tpu.memory_space<smem>>
    %37 = vector.broadcast %36 : f32 to vector<16x16xf32>
    %38 = arith.mulf %37, %31 : vector<16x16xf32>
    %39 = arith.addf %27, %38 : vector<16x16xf32>
    %c-2_i32 = arith.constant -2 : i32
    %40 = vector.broadcast %c-2_i32 : i32 to vector<16x16xi32>
    %41 = arith.cmpi eq, %25, %40 : vector<16x16xi32>
    %42 = arith.extui %41 : vector<16x16xi1> to vector<16x16xi32>
    %43 = arith.sitofp %42 : vector<16x16xi32> to vector<16x16xf32>
    %c1 = arith.constant 1 : index
    %44 = memref.load %arg3[%c1] : memref<16xf32, #tpu.memory_space<smem>>
    %45 = vector.broadcast %44 : f32 to vector<16x16xf32>
    %46 = arith.mulf %45, %43 : vector<16x16xf32>
    %47 = arith.addf %35, %46 : vector<16x16xf32>
    %c8 = arith.constant 8 : index
    %48 = memref.load %arg3[%c8] : memref<16xf32, #tpu.memory_space<smem>>
    %49 = vector.broadcast %48 : f32 to vector<16x16xf32>
    %50 = arith.mulf %49, %43 : vector<16x16xf32>
    %51 = arith.addf %39, %50 : vector<16x16xf32>
    %c-1_i32 = arith.constant -1 : i32
    %52 = vector.broadcast %c-1_i32 : i32 to vector<16x16xi32>
    %53 = arith.cmpi eq, %25, %52 : vector<16x16xi32>
    %54 = arith.extui %53 : vector<16x16xi1> to vector<16x16xi32>
    %55 = arith.sitofp %54 : vector<16x16xi32> to vector<16x16xf32>
    %c2 = arith.constant 2 : index
    %56 = memref.load %arg3[%c2] : memref<16xf32, #tpu.memory_space<smem>>
    %57 = vector.broadcast %56 : f32 to vector<16x16xf32>
    %58 = arith.mulf %57, %55 : vector<16x16xf32>
    %59 = arith.addf %47, %58 : vector<16x16xf32>
    %c9 = arith.constant 9 : index
    %60 = memref.load %arg3[%c9] : memref<16xf32, #tpu.memory_space<smem>>
    %61 = vector.broadcast %60 : f32 to vector<16x16xf32>
    %62 = arith.mulf %61, %55 : vector<16x16xf32>
    %63 = arith.addf %51, %62 : vector<16x16xf32>
    %c0_i32 = arith.constant 0 : i32
    %64 = vector.broadcast %c0_i32 : i32 to vector<16x16xi32>
    %65 = arith.cmpi eq, %25, %64 : vector<16x16xi32>
    %66 = arith.extui %65 : vector<16x16xi1> to vector<16x16xi32>
    %67 = arith.sitofp %66 : vector<16x16xi32> to vector<16x16xf32>
    %c3 = arith.constant 3 : index
    %68 = memref.load %arg3[%c3] : memref<16xf32, #tpu.memory_space<smem>>
    %69 = vector.broadcast %68 : f32 to vector<16x16xf32>
    %70 = arith.mulf %69, %67 : vector<16x16xf32>
    %71 = arith.addf %59, %70 : vector<16x16xf32>
    %c10 = arith.constant 10 : index
    %72 = memref.load %arg3[%c10] : memref<16xf32, #tpu.memory_space<smem>>
    %73 = vector.broadcast %72 : f32 to vector<16x16xf32>
    %74 = arith.mulf %73, %67 : vector<16x16xf32>
    %75 = arith.addf %63, %74 : vector<16x16xf32>
    %c1_i32 = arith.constant 1 : i32
    %76 = vector.broadcast %c1_i32 : i32 to vector<16x16xi32>
    %77 = arith.cmpi eq, %25, %76 : vector<16x16xi32>
    %78 = arith.extui %77 : vector<16x16xi1> to vector<16x16xi32>
    %79 = arith.sitofp %78 : vector<16x16xi32> to vector<16x16xf32>
    %c4 = arith.constant 4 : index
    %80 = memref.load %arg3[%c4] : memref<16xf32, #tpu.memory_space<smem>>
    %81 = vector.broadcast %80 : f32 to vector<16x16xf32>
    %82 = arith.mulf %81, %79 : vector<16x16xf32>
    %83 = arith.addf %71, %82 : vector<16x16xf32>
    %c11 = arith.constant 11 : index
    %84 = memref.load %arg3[%c11] : memref<16xf32, #tpu.memory_space<smem>>
    %85 = vector.broadcast %84 : f32 to vector<16x16xf32>
    %86 = arith.mulf %85, %79 : vector<16x16xf32>
    %87 = arith.addf %75, %86 : vector<16x16xf32>
    %c2_i32 = arith.constant 2 : i32
    %88 = vector.broadcast %c2_i32 : i32 to vector<16x16xi32>
    %89 = arith.cmpi eq, %25, %88 : vector<16x16xi32>
    %90 = arith.extui %89 : vector<16x16xi1> to vector<16x16xi32>
    %91 = arith.sitofp %90 : vector<16x16xi32> to vector<16x16xf32>
    %c5 = arith.constant 5 : index
    %92 = memref.load %arg3[%c5] : memref<16xf32, #tpu.memory_space<smem>>
    %93 = vector.broadcast %92 : f32 to vector<16x16xf32>
    %94 = arith.mulf %93, %91 : vector<16x16xf32>
    %95 = arith.addf %83, %94 : vector<16x16xf32>
    %c12 = arith.constant 12 : index
    %96 = memref.load %arg3[%c12] : memref<16xf32, #tpu.memory_space<smem>>
    %97 = vector.broadcast %96 : f32 to vector<16x16xf32>
    %98 = arith.mulf %97, %91 : vector<16x16xf32>
    %99 = arith.addf %87, %98 : vector<16x16xf32>
    %c3_i32 = arith.constant 3 : i32
    %100 = vector.broadcast %c3_i32 : i32 to vector<16x16xi32>
    %101 = arith.cmpi eq, %25, %100 : vector<16x16xi32>
    %102 = arith.extui %101 : vector<16x16xi1> to vector<16x16xi32>
    %103 = arith.sitofp %102 : vector<16x16xi32> to vector<16x16xf32>
    %c6 = arith.constant 6 : index
    %104 = memref.load %arg3[%c6] : memref<16xf32, #tpu.memory_space<smem>>
    %105 = vector.broadcast %104 : f32 to vector<16x16xf32>
    %106 = arith.mulf %105, %103 : vector<16x16xf32>
    %107 = arith.addf %95, %106 : vector<16x16xf32>
    %c13 = arith.constant 13 : index
    %108 = memref.load %arg3[%c13] : memref<16xf32, #tpu.memory_space<smem>>
    %109 = vector.broadcast %108 : f32 to vector<16x16xf32>
    %110 = arith.mulf %109, %103 : vector<16x16xf32>
    %111 = arith.addf %99, %110 : vector<16x16xf32>
    %c14 = arith.constant 14 : index
    %112 = memref.load %arg3[%c14] : memref<16xf32, #tpu.memory_space<smem>>
    %cst_15 = arith.constant dense<0.000000e+00> : vector<4x16xf32>
    %113 = vector.multi_reduction <add>, %22, %cst_15 [2] : vector<4x16x128xf32> to vector<4x16xf32>
    %cst_16 = arith.constant 1.280000e+02 : f32
    %114 = vector.broadcast %cst_16 : f32 to vector<4x16xf32>
    %115 = arith.divf %113, %114 : vector<4x16xf32>
    %cst_17 = arith.constant dense<0xFF800000> : vector<4x16xf32>
    %116 = vector.multi_reduction <maximumf>, %22, %cst_17 [2] : vector<4x16x128xf32> to vector<4x16xf32>
    %cst_18 = arith.constant dense<0.000000e+00> : vector<4x16xf32>
    %117 = tpu.matmul %115, %107, %cst_18 {dimension_numbers = #tpu.dot_dimension_numbers<[1], [0], [0], [1], [0, 0, 1, 1], [], []>} : vector<4x16xf32>, vector<16x16xf32>, vector<4x16xf32> -> vector<4x16xf32>
    %cst_19 = arith.constant dense<0.000000e+00> : vector<4x16xf32>
    %118 = tpu.matmul %116, %111, %cst_19 {dimension_numbers = #tpu.dot_dimension_numbers<[1], [0], [0], [1], [0, 0, 1, 1], [], []>} : vector<4x16xf32>, vector<16x16xf32>, vector<4x16xf32> -> vector<4x16xf32>
    %119 = arith.addf %117, %118 : vector<4x16xf32>
    %120 = vector.broadcast %112 : f32 to vector<4x16xf32>
    %121 = arith.addf %119, %120 : vector<4x16xf32>
    %122 = arith.negf %121 : vector<4x16xf32>
    %123 = math.exp %122 : vector<4x16xf32>
    %cst_20 = arith.constant 1.000000e+00 : f32
    %124 = vector.broadcast %cst_20 : f32 to vector<4x16xf32>
    %125 = arith.addf %124, %123 : vector<4x16xf32>
    %126 = arith.divf %124, %125 : vector<4x16xf32>
    %127 = vector.shape_cast %126 : vector<4x16xf32> to vector<4x16x1xf32>
    %128 = vector.broadcast %127 : vector<4x16x1xf32> to vector<4x16x128xf32>
    %129 = arith.mulf %128, %22 : vector<4x16x128xf32>
    %c0_21 = arith.constant 0 : index
    %c0_22 = arith.constant 0 : index
    %c0_23 = arith.constant 0 : index
    %130 = vector.load %arg2[%c0_21, %c0_22, %c0_23] : memref<4x1x128xf32, #tpu.memory_space<vmem>>, vector<4x1x128xf32>
    %131 = vector.shape_cast %130 : vector<4x1x128xf32> to vector<4x128xf32>
    %c0_24 = arith.constant 0 : index
    %c0_25 = arith.constant 0 : index
    %132 = vector.load %arg6[%c0_24, %c0_25] : memref<128x8xf32, #tpu.memory_space<vmem>>, vector<128x8xf32>
    %cst_26 = arith.constant dense<0.000000e+00> : vector<4x8xf32>
    %133 = tpu.matmul %131, %132, %cst_26 {dimension_numbers = #tpu.dot_dimension_numbers<[1], [0], [0], [1], [0, 0, 1, 1], [], []>} : vector<4x128xf32>, vector<128x8xf32>, vector<4x8xf32> -> vector<4x8xf32>
    %cst_27 = arith.constant 0.000000e+00 : f32
    %134 = vector.broadcast %cst_27 : f32 to vector<4x8xf32>
    %135 = arith.maximumf %133, %134 : vector<4x8xf32>
    %c0_28 = arith.constant 0 : index
    %c0_29 = arith.constant 0 : index
    %136 = vector.load %arg7[%c0_28, %c0_29] : memref<8x128xf32, #tpu.memory_space<vmem>>, vector<8x128xf32>
    %cst_30 = arith.constant dense<0.000000e+00> : vector<4x128xf32>
    %137 = tpu.matmul %135, %136, %cst_30 {dimension_numbers = #tpu.dot_dimension_numbers<[1], [0], [0], [1], [0, 0, 1, 1], [], []>} : vector<4x8xf32>, vector<8x128xf32>, vector<4x128xf32> -> vector<4x128xf32>
    %138 = arith.negf %137 : vector<4x128xf32>
    %139 = math.exp %138 : vector<4x128xf32>
    %cst_31 = arith.constant 1.000000e+00 : f32
    %140 = vector.broadcast %cst_31 : f32 to vector<4x128xf32>
    %141 = arith.addf %140, %139 : vector<4x128xf32>
    %142 = arith.divf %140, %141 : vector<4x128xf32>
    %143 = vector.shape_cast %142 : vector<4x128xf32> to vector<4x1x128xf32>
    %144 = vector.broadcast %143 : vector<4x1x128xf32> to vector<4x16x128xf32>
    %145 = arith.mulf %144, %0 : vector<4x16x128xf32>
    %146 = vector.shape_cast %22 : vector<4x16x128xf32> to vector<64x128xf32>
    %147 = vector.shape_cast %129 : vector<4x16x128xf32> to vector<64x128xf32>
    %148 = vector.shape_cast %145 : vector<4x16x128xf32> to vector<64x128xf32>
    %149 = vector.shape_cast %0 : vector<4x16x128xf32> to vector<64x128xf32>
    %150 = arith.truncf %149 : vector<64x128xf32> to vector<64x128xbf16>
    %151 = arith.truncf %146 : vector<64x128xf32> to vector<64x128xbf16>
    %152 = arith.truncf %147 : vector<64x128xf32> to vector<64x128xbf16>
    %153 = arith.truncf %148 : vector<64x128xf32> to vector<64x128xbf16>
    %154 = tpu.concatenate %150, %151, %152, %153 in 0 : vector<64x128xbf16>, vector<64x128xbf16>, vector<64x128xbf16>, vector<64x128xbf16> -> vector<256x128xbf16>
    %c0_32 = arith.constant 0 : index
    %c0_33 = arith.constant 0 : index
    %155 = vector.load %arg8[%c0_32, %c0_33] : memref<128x128xbf16, #tpu.memory_space<vmem>>, vector<128x128xbf16>
    %cst_34 = arith.constant dense<0.000000e+00> : vector<256x128xf32>
    %156 = tpu.matmul %154, %155, %cst_34 {dimension_numbers = #tpu.dot_dimension_numbers<[1], [0], [0], [1], [0, 0, 1, 1], [], []>} : vector<256x128xbf16>, vector<128x128xbf16>, vector<256x128xf32> -> vector<256x128xf32>
    %cst_35 = arith.constant 0.000000e+00 : f32
    %157 = vector.broadcast %cst_35 : f32 to vector<256x128xf32>
    %158 = arith.cmpf oge, %156, %157 : vector<256x128xf32>
    %cst_36 = arith.constant 0.00999999977 : f32
    %159 = vector.broadcast %cst_36 : f32 to vector<256x128xf32>
    %160 = arith.mulf %159, %156 : vector<256x128xf32>
    %161 = arith.select %158, %156, %160 : vector<256x128xi1>, vector<256x128xf32>
    %162 = vector.extract_strided_slice %161 {offsets = [0, 0], sizes = [64, 128], strides = [1, 1]} : vector<256x128xf32> to vector<64x128xf32>
    %cst_37 = arith.constant 4.000000e-01 : f32
    %163 = vector.broadcast %cst_37 : f32 to vector<64x128xf32>
    %164 = arith.mulf %163, %162 : vector<64x128xf32>
    %165 = vector.extract_strided_slice %161 {offsets = [64, 0], sizes = [64, 128], strides = [1, 1]} : vector<256x128xf32> to vector<64x128xf32>
    %cst_38 = arith.constant 2.000000e-01 : f32
    %166 = vector.broadcast %cst_38 : f32 to vector<64x128xf32>
    %167 = arith.mulf %166, %165 : vector<64x128xf32>
    %168 = arith.addf %164, %167 : vector<64x128xf32>
    %169 = vector.extract_strided_slice %161 {offsets = [128, 0], sizes = [64, 128], strides = [1, 1]} : vector<256x128xf32> to vector<64x128xf32>
    %cst_39 = arith.constant 2.000000e-01 : f32
    %170 = vector.broadcast %cst_39 : f32 to vector<64x128xf32>
    %171 = arith.mulf %170, %169 : vector<64x128xf32>
    %172 = arith.addf %168, %171 : vector<64x128xf32>
    %173 = vector.extract_strided_slice %161 {offsets = [192, 0], sizes = [64, 128], strides = [1, 1]} : vector<256x128xf32> to vector<64x128xf32>
    %cst_40 = arith.constant 2.000000e-01 : f32
    %174 = vector.broadcast %cst_40 : f32 to vector<64x128xf32>
    %175 = arith.mulf %174, %173 : vector<64x128xf32>
    %176 = arith.addf %172, %175 : vector<64x128xf32>
    %177 = arith.truncf %176 : vector<64x128xf32> to vector<64x128xbf16>
    %c0_41 = arith.constant 0 : index
    %c0_42 = arith.constant 0 : index
    %178 = vector.load %arg9[%c0_41, %c0_42] : memref<128x128xbf16, #tpu.memory_space<vmem>>, vector<128x128xbf16>
    %cst_43 = arith.constant dense<0.000000e+00> : vector<64x128xf32>
    %179 = tpu.matmul %177, %178, %cst_43 {dimension_numbers = #tpu.dot_dimension_numbers<[1], [0], [0], [1], [0, 0, 1, 1], [], []>} : vector<64x128xbf16>, vector<128x128xbf16>, vector<64x128xf32> -> vector<64x128xf32>
    %cst_44 = arith.constant 0.000000e+00 : f32
    %180 = vector.broadcast %cst_44 : f32 to vector<64x128xf32>
    %181 = arith.cmpf oge, %179, %180 : vector<64x128xf32>
    %cst_45 = arith.constant 0.00999999977 : f32
    %182 = vector.broadcast %cst_45 : f32 to vector<64x128xf32>
    %183 = arith.mulf %182, %179 : vector<64x128xf32>
    %184 = arith.select %181, %179, %183 : vector<64x128xi1>, vector<64x128xf32>
    %cst_46 = arith.constant 3.000000e-01 : f32
    %185 = vector.broadcast %cst_46 : f32 to vector<64x128xf32>
    %186 = arith.mulf %185, %184 : vector<64x128xf32>
    %cst_47 = arith.constant 2.000000e-01 : f32
    %187 = vector.broadcast %cst_47 : f32 to vector<64x128xf32>
    %188 = arith.mulf %187, %146 : vector<64x128xf32>
    %189 = arith.addf %186, %188 : vector<64x128xf32>
    %cst_48 = arith.constant 2.000000e-01 : f32
    %190 = vector.broadcast %cst_48 : f32 to vector<64x128xf32>
    %191 = arith.mulf %190, %147 : vector<64x128xf32>
    %192 = arith.addf %189, %191 : vector<64x128xf32>
    %cst_49 = arith.constant 3.000000e-01 : f32
    %193 = vector.broadcast %cst_49 : f32 to vector<64x128xf32>
    %194 = arith.mulf %193, %148 : vector<64x128xf32>
    %195 = arith.addf %192, %194 : vector<64x128xf32>
    %196 = vector.shape_cast %176 : vector<64x128xf32> to vector<4x16x128xf32>
    %c0_50 = arith.constant 0 : index
    %c0_51 = arith.constant 0 : index
    %c0_52 = arith.constant 0 : index
    %197 = vector.load %arg10[%c0_50, %c0_51, %c0_52] : memref<4x16x128xf32, #tpu.memory_space<vmem>>, vector<4x16x128xf32>
    tpu.vector_store %arg10[%c0_50, %c0_51, %c0_52], %196 {strides = array<i32>} : memref<4x16x128xf32, #tpu.memory_space<vmem>>, vector<4x16x128xf32>,
    %198 = vector.shape_cast %195 : vector<64x128xf32> to vector<4x16x128xf32>
    %c0_53 = arith.constant 0 : index
    %c0_54 = arith.constant 0 : index
    %c0_55 = arith.constant 0 : index
    %199 = vector.load %arg11[%c0_53, %c0_54, %c0_55] : memref<4x16x128xf32, #tpu.memory_space<vmem>>, vector<4x16x128xf32>
    tpu.vector_store %arg11[%c0_53, %c0_54, %c0_55], %198 {strides = array<i32>} : memref<4x16x128xf32, #tpu.memory_space<vmem>>, vector<4x16x128xf32>,
    return
  }
  func.func @transform_0(%arg0: i32) -> (i32, i32, i32) {
    %c0_i32 = arith.constant 0 : i32
    %c0_i32_0 = arith.constant 0 : i32
    %c0_i32_1 = arith.constant 0 : i32
    return %arg0, %c0_i32, %c0_i32_0 : i32, i32, i32
  }
  func.func @transform_1(%arg0: i32) -> (i32, i32, i32) {
    %c0_i32 = arith.constant 0 : i32
    %c0_i32_0 = arith.constant 0 : i32
    %c0_i32_1 = arith.constant 0 : i32
    return %arg0, %c0_i32, %c0_i32_0 : i32, i32, i32
  }
  func.func @transform_2(%arg0: i32) -> i32 {
    %c0_i32 = arith.constant 0 : i32
    %c0_i32_0 = arith.constant 0 : i32
    return %c0_i32 : i32
  }
  func.func @transform_3(%arg0: i32) -> (i32, i32) {
    %c0_i32 = arith.constant 0 : i32
    %c0_i32_0 = arith.constant 0 : i32
    %c0_i32_1 = arith.constant 0 : i32
    return %c0_i32, %c0_i32_0 : i32, i32
  }
  func.func @transform_4(%arg0: i32) -> (i32, i32) {
    %c0_i32 = arith.constant 0 : i32
    %c0_i32_0 = arith.constant 0 : i32
    %c0_i32_1 = arith.constant 0 : i32
    return %c0_i32, %c0_i32_0 : i32, i32
  }
  func.func @transform_5(%arg0: i32) -> (i32, i32) {
    %c0_i32 = arith.constant 0 : i32
    %c0_i32_0 = arith.constant 0 : i32
    %c0_i32_1 = arith.constant 0 : i32
    return %c0_i32, %c0_i32_0 : i32, i32
  }
  func.func @transform_6(%arg0: i32) -> (i32, i32) {
    %c0_i32 = arith.constant 0 : i32
    %c0_i32_0 = arith.constant 0 : i32
    %c0_i32_1 = arith.constant 0 : i32
    return %c0_i32, %c0_i32_0 : i32, i32
  }
  func.func @transform_7(%arg0: i32) -> (i32, i32) {
    %c0_i32 = arith.constant 0 : i32
    %c0_i32_0 = arith.constant 0 : i32
    %c0_i32_1 = arith.constant 0 : i32
    return %c0_i32, %c0_i32_0 : i32, i32
  }
  func.func @transform_8(%arg0: i32) -> (i32, i32) {
    %c0_i32 = arith.constant 0 : i32
    %c0_i32_0 = arith.constant 0 : i32
    %c0_i32_1 = arith.constant 0 : i32
    return %c0_i32, %c0_i32_0 : i32, i32
  }
  func.func @transform_9(%arg0: i32) -> (i32, i32, i32) {
    %c0_i32 = arith.constant 0 : i32
    %c0_i32_0 = arith.constant 0 : i32
    %c0_i32_1 = arith.constant 0 : i32
    return %arg0, %c0_i32, %c0_i32_0 : i32, i32, i32
  }
  func.func @transform_10(%arg0: i32) -> (i32, i32, i32) {
    %c0_i32 = arith.constant 0 : i32
    %c0_i32_0 = arith.constant 0 : i32
    %c0_i32_1 = arith.constant 0 : i32
    return %arg0, %c0_i32, %c0_i32_0 : i32, i32, i32
  }
}

</mosaic_0001>

<bundles_post_ra>
// kernel: tpu_custom_call.1
= control target key start
LH: loop header
LB: loop body
LE: loop exit
PB: predicated region body
PF: predicated region fallthrough
CT: control target
= control target key end

     0   :  { %16 = vsyncpa [#allocation4], 0  ;;  %s2951_s0 = inlined_call_operand.vmem [shape: f32[4,16,128], index: 0, kind: input, shape index: {}]   ;;  %s2952_s1 = inlined_call_operand.vmem [shape: f32[4,1,128], index: 1, kind: input, shape index: {}]   ;;  %s2953_s2 = inlined_call_operand.vmem [shape: f32[16], index: 2, kind: input, shape index: {}]   ;;  %s2954_s3 = inlined_call_operand.vmem [shape: f32[128,8], index: 3, kind: input, shape index: {}]   ;;  %s2955_s4 = inlined_call_operand.vmem [shape: f32[8,128], index: 4, kind: input, shape index: {}]   ;;  %s2956_s5 = inlined_call_operand.vmem [shape: f32[128,8], index: 5, kind: input, shape index: {}]   ;;  %s2957_s6 = inlined_call_operand.vmem [shape: f32[8,128], index: 6, kind: input, shape index: {}]   ;;  %s2958_s7 = inlined_call_operand.vmem [shape: bf16[128,128], index: 7, kind: input, shape index: {}]   ;;  %s2959_s8 = inlined_call_operand.vmem [shape: bf16[128,128], index: 8, kind: input, shape index: {}]   ;;  %s2960_s9 = inlined_call_operand.hbm [shape: f32[4,16,128], index: 9, kind: output, shape index: {0}]   ;;  %s2961_s10 = inlined_call_operand.hbm [shape: f32[4,16,128], index: 10, kind: output, shape index: {1}]  }
   0x1   :  { %17 = vsyncpa [#allocation3], 0 }
   0x2   :  { %18 = vsyncpa [#allocation7], 0  ;;  %s29_s15 = sshll.u32 %s2953_s2, 4  ;;  %s30_s15 = int_to_ptr.vmem [resolvable:$true] %s29_s15 }
   0x3   :  { %s2148_s16 = scalar_lea.vmem %s30_s15, 16  ;;  %p2153_p1 = scmp.lt.s32.totalorder %s30_s15, %s30_s15 }
   0x4   :  { %p2149_p0 = scmp.ne.s32.totalorder %s30_s15, %s2148_s16  ;;  %p2154_p2 = scmp.lt.s32.totalorder %s2148_s16, %s2148_s16 }
   0x6   :  { %p2155_p3 = por %p2154_p2, %p2153_p1 }
   0x8   :  { %p2156_p4 = pnand %p2155_p3, %p2149_p0 }
   0xa   :  { %2159 = shalt.err (!%p2156_p4)
}
   0xb   :  { %s2210_s17 = smov [#allocation2]  }
   0xc   :  { %32 = dma.vmem_to_smem %s30_s15, 16, %s2210_s17, [#allocation4]  }
   0xd   :  { %2204 = dma.done.wait [#allocation4], 16  }
   0xe   :  { %2205 = vsyncadd [#allocation4], 4294967280 }
   0xf   :  { %48 = sfence }
  0x10   :  { %v143_v0 = vld [vmem:[%s2954_s3] sm:$0xff]  ;;  %v144_v1 = vld [vmem:[%s2954_s3 + $0x8] sm:$0xff]  ;;  %v145_v2 = vld [vmem:[%s2954_s3 + $0x10] sm:$0xff]  ;;  %v2211_v3 = vmov 0.0|0.0   ;;  %vm2212_vm0 = vmmov 0   ;;  %v2213_v6 = vmov 0.0  }
  0x11   :  { %2049 = vmatprep.subr.bf16.mxu1 %v2211_v3  ;;  %v2050_v4 = vpack.c.bf16 %v144_v1, %v143_v0  ;;  %v146_v5 = vld [vmem:[%s2954_s3 + $0x18] sm:$0xff]  ;;  %1915 = vmatprep.mubr.msk.f32.mxu1 %vm2212_vm0, %v2213_v6  ;;  %v147_v8 = vld [vmem:[%s2954_s3 + $0x20] sm:$0xff]  ;;  %v148_v9 = vld [vmem:[%s2954_s3 + $0x28] sm:$0xff]  ;;  %vm134_vm1 = vcmask 1045509   ;;  %vm123_vm2 = vcmask 1041409   ;;  %vm125_vm3 = vcmask 1042434  }
  0x12   :  { %v2053_v7 = vpack.c.bf16 %v146_v5, %v145_v2  ;;  %v149_v10 = vld [vmem:[%s2954_s3 + $0x30] sm:$0xff]  ;;  %v150_v11 = vld [vmem:[%s2954_s3 + $0x38] sm:$0xff]  ;;  %v2308_v12 = vld [vmem:[%s2954_s3 + $0x40] sm:$0xff]  ;;  %v2056_v16 = vpack.c.bf16 %v148_v9, %v147_v8  ;;  %vm136_vm4 = vcmask 1046534   ;;  %vm127_vm5 = vcmask 1043459   ;;  %s1760_s19 = sld [smem:[#allocation2 + $0x8]] }
  0x13   :  { %2051 = vmatpush3.bf16.msra.mxu1 %v2050_v4  ;;  %v2313_v13 = vld [vmem:[%s2954_s3 + $0x48] sm:$0xff]  ;;  %v2318_v14 = vld [vmem:[%s2951_s0] sm:$0xff]  ;;  %v2328_v17 = vld [vmem:[%s2951_s0 + $0x10] sm:$0xff]  ;;  %v2059_v22 = vpack.c.bf16 %v150_v11, %v149_v10  ;;  %vm138_vm6 = vcmask 1047559   ;;  %vm141_vm7 = vcmask 1043456   ;;  %vm231_vm8 = vcmask 64512  }
  0x14   :  { %2052 = vmatprep.subr.bf16.mxu1 %v2211_v3  ;;  %v2323_v15 = vld [vmem:[%s2951_s0 + $0x8] sm:$0xff]  ;;  %v2333_v18 = vld [vmem:[%s2951_s0 + $0x18] sm:$0xff]  ;;  %v2338_v19 = vld [vmem:[%s2951_s0 + $0x20] sm:$0xff]  ;;  %v2062_v23 = vpack.c.bf16 %v2313_v13, %v2308_v12  ;;  %s2503_s20 = sld [smem:[#allocation2 + $0x9]]  ;;  %s2514_s21 = sld [smem:[#allocation2 + $0xa]] }
  0x15   :  { %v58_v20 = vadd.f32 %v2323_v15, %v2318_v14  ;;  %v91_v21 = vmax.f32 %v2318_v14, %v2323_v15  ;;  %v2349_v24 = vld [vmem:[%s2951_s0 + $0x28] sm:$0xff]  ;;  %v2354_v25 = vld [vmem:[%s2951_s0 + $0x30] sm:$0xff]  ;;  %v2359_v26 = vld [vmem:[%s2951_s0 + $0x38] sm:$0xff]  ;;  %v65_v27 = vadd.f32 %v2333_v18, %v2328_v17  ;;  %v98_v28 = vmax.f32 %v2328_v17, %v2333_v18  ;;  %s2529_s2 = sld [smem:[#allocation2 + $0xb]]  ;;  %s2542_s22 = sld [smem:[#allocation2 + $0xc]] }
  0x16   :  { %v72_v30 = vadd.f32 %v2349_v24, %v2338_v19  ;;  %v79_v31 = vadd.f32 %v2359_v26, %v2354_v25  ;;  %v105_v35 = vmax.f32 %v2338_v19, %v2349_v24  ;;  %v112_v36 = vmax.f32 %v2354_v25, %v2359_v26  ;;  %v153_v53 = vld [vmem:[%s2954_s3 + $0x50] sm:$0xff]  ;;  %v154_v54 = vld [vmem:[%s2954_s3 + $0x58] sm:$0xff]  ;;  %v155_v9 = vld [vmem:[%s2954_s3 + $0x60] sm:$0xff]  ;;  %s2550_s23 = sld [smem:[#allocation2]]  ;;  %s2559_s24 = sld [smem:[#allocation2 + $0x1]] }
  0x17   :  { %2054 = vmatpush3.bf16.msra.mxu1 %v2053_v7  ;;  %v59_v29 = vrot.slane %v58_v20, 4  ;;  %v92_v32 = vrot.slane %v91_v21, 4  ;;  %v66_v33 = vrot.slane %v65_v27, 4  ;;  %v99_v34 = vrot.slane %v98_v28, 4  ;;  %s2561_s25 = sld [smem:[#allocation2 + $0x2]]  ;;  %s2568_s26 = sld [smem:[#allocation2 + $0x3]] }
  0x18   :  { %2055 = vmatprep.subr.bf16.mxu1 %v2211_v3  ;;  %v73_v38 = vrot.slane %v72_v30, 4  ;;  %v80_v39 = vrot.slane %v79_v31, 4  ;;  %v106_v43 = vrot.slane %v105_v35, 4  ;;  %v113_v44 = vrot.slane %v112_v36, 4  ;;  %s2570_s27 = sld [smem:[#allocation2 + $0x4]]  ;;  %s2584_s28 = sld [smem:[#allocation2 + $0x6]] }
  0x19   :  { %v60_v37 = vadd.f32 %v59_v29, %v58_v20  ;;  %v93_v40 = vmax.f32 %v91_v21, %v92_v32  ;;  %v67_v41 = vadd.f32 %v66_v33, %v65_v27  ;;  %v100_v42 = vmax.f32 %v98_v28, %v99_v34  ;;  %v156_v20 = vld [vmem:[%s2954_s3 + $0x68] sm:$0xff] }
  0x1a   :  { %v74_v46 = vadd.f32 %v73_v38, %v72_v30  ;;  %v81_v47 = vadd.f32 %v80_v39, %v79_v31  ;;  %v107_v51 = vmax.f32 %v105_v35, %v106_v43  ;;  %v114_v52 = vmax.f32 %v112_v36, %v113_v44  ;;  %v158_v38 = vld [vmem:[%s2954_s3 + $0x78] sm:$0xff] }
  0x1b   :  { %2057 = vmatpush3.bf16.msra.mxu1 %v2056_v16  ;;  %v61_v45 = vrot.slane %v60_v37, 2  ;;  %v94_v48 = vrot.slane %v93_v40, 2  ;;  %v68_v49 = vrot.slane %v67_v41, 2  ;;  %v101_v50 = vrot.slane %v100_v42, 2 }
  0x1c   :  { %2058 = vmatprep.subr.bf16.mxu1 %v2211_v3  ;;  %v75_v56 = vrot.slane %v74_v46, 2  ;;  %v82_v57 = vrot.slane %v81_v47, 2  ;;  %v108_v61 = vrot.slane %v107_v51, 2  ;;  %v115_v62 = vrot.slane %v114_v52, 2 }
  0x1d   :  { %v62_v55 = vadd.f32 %v61_v45, %v60_v37  ;;  %v95_v58 = vmax.f32 %v93_v40, %v94_v48  ;;  %v69_v59 = vadd.f32 %v68_v49, %v67_v41  ;;  %v102_v60 = vmax.f32 %v100_v42, %v101_v50  ;;  %v157_v37 = vld [vmem:[%s2954_s3 + $0x70] sm:$0xff]  ;;  %v2112_v48 = vld [vmem:[%s2958_s7] sm:$0xff]   ;;  %v2113_v49 = vld [vmem:[%s2958_s7 + $0x8] sm:$0xff]   ;;  %s2548_s3 = sld [smem:[#allocation2 + $0xd]] }
  0x1e   :  { %v76_v0 = vadd.f32 %v75_v56, %v74_v46  ;;  %v83_v1 = vadd.f32 %v82_v57, %v81_v47  ;;  %v109_v7 = vmax.f32 %v107_v51, %v108_v61  ;;  %v116_v8 = vmax.f32 %v114_v52, %v115_v62  ;;  %v230_v47 = vld [vmem:[%s2955_s4] sm:$0xff]  ;;  %1977 = vmatprep.subr.bf16.mxu0 %v2112_v48  ;;  %v2117_v56 = vld [vmem:[%s2958_s7 + $0x28] sm:$0xff]   ;;  %v2118_v57 = vld [vmem:[%s2958_s7 + $0x30] sm:$0xff]   ;;  %s2577_s4 = sld [smem:[#allocation2 + $0x5]] }
  0x1f   :  { %2060 = vmatpush3.bf16.msra.mxu1 %v2059_v22  ;;  %v63_v63 = vrot.slane %v62_v55, 1  ;;  %v96_v2 = vrot.slane %v95_v58, 1  ;;  %v70_v4 = vrot.slane %v69_v59, 1  ;;  %v103_v5 = vrot.slane %v102_v60, 1  ;;  %1978 = vmatpush3.bf16.msra.mxu0 %v2112_v48 }
  0x20   :  { %2061 = vmatprep.subr.bf16.mxu1 %v2211_v3  ;;  %v77_v11 = vrot.slane %v76_v0, 1  ;;  %v84_v12 = vrot.slane %v83_v1, 1  ;;  %v2065_v16 = vpack.c.bf16 %v154_v54, %v153_v53  ;;  %v110_v27 = vrot.slane %v109_v7, 1  ;;  %1979 = vmatprep.subr.bf16.mxu0 %v2113_v49  ;;  %v2114_v53 = vld [vmem:[%s2958_s7 + $0x10] sm:$0xff]   ;;  %v2115_v54 = vld [vmem:[%s2958_s7 + $0x18] sm:$0xff]  }
  0x21   :  { %v64_v10 = vadd.f32 %v63_v63, %v62_v55  ;;  %v97_v13 = vmax.f32 %v95_v58, %v96_v2  ;;  %v71_v21 = vadd.f32 %v70_v4, %v69_v59  ;;  %v104_v22 = vmax.f32 %v102_v60, %v103_v5  ;;  %v2116_v55 = vld [vmem:[%s2958_s7 + $0x20] sm:$0xff]   ;;  %v2119_v58 = vld [vmem:[%s2958_s7 + $0x38] sm:$0xff]   ;;  %s1756_s7 = sld [smem:[#allocation2 + $0x7]] }
  0x22   :  { %v78_v28 = vadd.f32 %v77_v11, %v76_v0  ;;  %v85_v29 = vadd.f32 %v84_v12, %v83_v1  ;;  %v117_v31 = vrot.slane %v116_v8, 1  ;;  %v111_v33 = vmax.f32 %v109_v7, %v110_v27 }
  0x23   :  { %2063 = vmatpush3.bf16.msra.mxu1 %v2062_v23  ;;  %v87_v30 = vmul.f32 0.0625, %v64_v10  ;;  %v88_v32 = vmul.f32 0.0625, %v71_v21  ;;  %v135_v23 = vsel %vm134_vm1, %v104_v22, %v97_v13  ;;  %v2068_v35 = vpack.c.bf16 %v156_v20, %v155_v9  ;;  %1980 = vmatpush3.bf16.msra.mxu0 %v2113_v49 }
  0x24   :  { %2064 = vmatprep.subr.bf16.mxu1 %v2211_v3  ;;  %v89_v34 = vmul.f32 0.0625, %v78_v28  ;;  %v90_v39 = vmul.f32 0.0625, %v85_v29  ;;  %v118_v40 = vmax.f32 %v116_v8, %v117_v31  ;;  %v137_v42 = vsel %vm136_vm4, %v111_v33, %v135_v23  ;;  %1981 = vmatprep.subr.bf16.mxu0 %v2114_v53 }
  0x25   :  { %v124_v36 = vsel %vm123_vm2, %v88_v32, %v87_v30  ;;  %v2071_v43 = vpack.c.bf16 %v158_v38, %v157_v37  ;;  %v1097_v59 = vpack.c.bf16 %v2323_v15, %v2318_v14  ;;  %v1098_v60 = vpack.c.bf16 %v2333_v18, %v2328_v17 }
  0x26   :  { %v126_v41 = vsel %vm125_vm3, %v89_v34, %v124_v36  ;;  %v139_v45 = vsel %vm138_vm6, %v118_v40, %v137_v42  ;;  %v1099_v61 = vpack.c.bf16 %v2349_v24, %v2338_v19  ;;  %v1100_v62 = vpack.c.bf16 %v2359_v26, %v2354_v25 }
  0x27   :  { %2066 = vmatpush3.bf16.msra.mxu1 %v2065_v16  ;;  %v128_v44 = vsel %vm127_vm5, %v90_v39, %v126_v41  ;;  %1982 = vmatpush3.bf16.msra.mxu0 %v2114_v53  ;;  %v2214_v8 = vmov 1966171168   ;;  %v319_v10 = vlaneseq  ;;  %v406_v49 = vstv %s1760_s19 }
  0x28   :  { %2067 = vmatprep.subr.bf16.mxu1 %v2211_v3  ;;  %v142_v46 = vsel %vm141_vm7, %v128_v44, %v139_v45  ;;  %1983 = vmatprep.subr.bf16.mxu0 %v2115_v54  ;;  %v317_v9 = vunpack.c.l.s4 %v2214_v8  ;;  %v388_v44 = vstv %s1756_s7 }
  0x29   :  { %1993 = vmatprep.mubr.bf16.mxu0 %v1097_v59  ;;  %v2443_v12 = vshrl.u32 %v319_v10, 7 }
  0x2a   :  { %v318_v11 = vunpack.c.0.s8 %v317_v9 }
  0x2b   :  { %2069 = vmatpush3.bf16.msra.mxu1 %v2068_v35  ;;  %1984 = vmatpush3.bf16.msra.mxu0 %v2115_v54  ;;  %v2450_v21 = vsub.s32 0, %v2443_v12  ;;  %v424_v54 = vstv %s2503_s20 }
  0x2c   :  { %2070 = vmatprep.subr.bf16.mxu1 %v2211_v3  ;;  %1985 = vmatprep.subr.bf16.mxu0 %v2116_v55  ;;  %v2446_v13 = vsub.s32 %v318_v11, %v2443_v12 }
  0x2f   :  { %2072 = vmatpush3.bf16.msra.mxu1 %v2071_v43  ;;  %1986 = vmatpush3.bf16.msra.mxu0 %v2116_v55 }
  0x30   :  { %1918 = vmatprep.subr.mxu1 %v2213_v6  ;;  %1987 = vmatprep.subr.bf16.mxu0 %v2117_v56 }
  0x32   :  { %1916 = vmatmul.mubr.f32.vlgmr.msra.gmra.mrb[0].mxu1 %v142_v46 }
  0x33   :  { %1919 = vmatpush3.msra.mxu1 %v230_v47  ;;  %1920 = vmatprep.mubr.msk.f32.mxu1 %vm2212_vm0, %v2213_v6 }
  0x34   :  { %2073 = vmatprep.subr.bf16.mxu1 %v2211_v3  ;;  %1988 = vmatpush3.bf16.msra.mxu0 %v2117_v56 }
  0x35   :  { %1989 = vmatprep.subr.bf16.mxu0 %v2118_v57 }
  0x38   :  { %1990 = vmatpush3.bf16.msra.mxu0 %v2118_v57 }
  0x39   :  { %1991 = vmatprep.subr.bf16.mxu0 %v2119_v58 }
  0x3c   :  { %1992 = vmatpush3.bf16.msra.mxu0 %v2119_v58 }
  0x3f   :  { %1994 = vmatmul.mubr.bf16.vlgmr.msra.gmra.mrb[0].mxu0 %v1098_v60  ;;  %v442_v60 = vstv %s2514_s21 }
  0x40   :  { %1997 = vmatprep.mubr.bf16.mxu0 %v1099_v61 }
  0x47   :  { %1998 = vmatmul.mubr.bf16.gmra.mrb[4].mxu0 %v1100_v62 }
 0x105   :  { %v225_v50 = vpop.f32.mrb[0].mxu1 }
 0x106   :  { %v229_v51 = vmax.f32 %v225_v50, 0.0  ;;  %v1917_v52 = vpop.f32.mrb[1].mxu1 }
 0x108   :  { %1921 = vmatmul.mubr.msk.f32.vlgmr.msra.gmra.mrb[2].mxu1 %vm231_vm8, %v229_v51 }
 0x109   :  { %1927 = vmatprep.mubr.msk.f32.mxu1 %vm2212_vm0, %v2213_v6 }
 0x1db   :  { %v301_v63 = vpop.f32.mrb[2].mxu1 }
 0x1dc   :  { %v306_v0 = vrot.slane %v301_v63, 4  ;;  %v1922_v1 = vpop.f32.mrb[3].mxu1 }
 0x1de   :  { %v308_v2 = vadd.f32 %v306_v0, %v301_v63 }
 0x1e0   :  { %v1753_v4 = vmul.f32 -1.442695, %v308_v2 }
 0x1e2   :  { %2128 = vpow2.f32 %v1753_v4  ;;  %v460_v4 = vstv %s2529_s2 }
 0x1ec   :  { %v2129_v5 = vpop.eup %2128 }
 0x1ed   :  { %v312_v7 = vadd.f32 1.0, %v2129_v5 }
 0x1ef   :  { %2130 = vrcp.f32 %v312_v7 }
 0x1f9   :  { %v2131_v16 = vpop.eup %2130 }
 0x1fa   :  { %v322_v20 = vrot.slane %v2131_v16, %v2446_v13 }
 0x1fc   :  { %v330_v22 = vrot.slane %v322_v20, %v2446_v13  ;;  %v323_v27 = vcombine.high %v322_v20, %v322_v20 }
 0x1fe   :  { %v343_v28 = vrot.slane %v330_v22, %v2450_v21  ;;  %v338_v29 = vcombine.high %v330_v22, %v330_v22  ;;  %v337_v30 = vrot.slane %v323_v27, %v2446_v13  ;;  %v478_v22 = vstv %s2542_s22 }
 0x200   :  { %v2456_v31 = vmul.f32 %v343_v28, %v2323_v15  ;;  %v2459_v32 = vmul.f32 %v343_v28, %v2318_v14  ;;  %v347_v33 = vrot.slane %v337_v30, %v2450_v21  ;;  %v339_v34 = vcombine.high %v337_v30, %v337_v30 }
 0x201   :  { %v351_v23 = vrot.slane %v338_v29, %v2450_v21 }
 0x202   :  { %504 = vadd.xlane.f32.xlu1 %v2456_v31  ;;  %527 = vmax.xlane.f32.xlu0 %v2459_v32  ;;  %v1101_v35 = vpack.c.bf16 %v2456_v31, %v2459_v32  ;;  %v2468_v36 = vmul.f32 %v347_v33, %v2328_v17  ;;  %v2471_v15 = vmul.f32 %v347_v33, %v2333_v18 }
 0x203   :  { %v2474_v14 = vmul.f32 %v351_v23, %v2338_v19  ;;  %v2477_v37 = vmul.f32 %v351_v23, %v2349_v24  ;;  %v355_v40 = vrot.slane %v339_v34, %v2450_v21  ;;  %v2500_v24 = vand.u32 127, %v319_v10 }
 0x204   :  { %2001 = vmatprep.mubr.bf16.mxu0 %v1101_v35  ;;  %v1102_v38 = vpack.c.bf16 %v2471_v15, %v2468_v36  ;;  %v496_v34 = vstv %s2548_s3  ;;  %v382_v23 = vstv %s2550_s23  ;;  %s1781_s3 = sld [smem:[#allocation2 + $0xe]] }
 0x205   :  { %v1103_v39 = vpack.c.bf16 %v2477_v37, %v2474_v14  ;;  %v2487_v17 = vmul.f32 %v355_v40, %v2354_v25  ;;  %v2490_v18 = vmul.f32 %v355_v40, %v2359_v26  ;;  %v370_v25 = vadd.s32 8, %v2443_v12 }
 0x206   :  { %529 = vmax.xlane.f32.xlu0 %v2456_v31  ;;  %531 = vmax.xlane.f32.xlu1 %v2468_v36  ;;  %v2509_v26 = vsub.s32 %v2443_v12, %v2500_v24 }
 0x207   :  { %2002 = vmatmul.mubr.bf16.gmra.mrb[8].mxu0 %v1102_v38  ;;  %v1104_v19 = vpack.c.bf16 %v2490_v18, %v2487_v17  ;;  %v2512_v41 = vsub.s32 %v370_v25, %v2500_v24 }
 0x208   :  { %2005 = vmatprep.mubr.bf16.mxu0 %v1103_v39  ;;  %vm375_vm9 = vcmp.eq.s32.totalorder %v2509_v26, 4294967293  ;;  %vm393_vm11 = vcmp.eq.s32.totalorder %v2509_v26, 4294967294  ;;  %vm411_vm13 = vcmp.eq.s32.totalorder %v2509_v26, 4294967295  ;;  %vm429_vm15 = vcmp.eq.s32.totalorder %v2509_v26, 0 }
 0x209   :  { %vm376_vm10 = vcmp.eq.s32.totalorder %v2512_v41, 4294967293  ;;  %vm394_vm12 = vcmp.eq.s32.totalorder %v2512_v41, 4294967294  ;;  %v2521_v42 = vsel %vm375_vm9, 1.0, %v2213_v6  ;;  %v2527_v45 = vsel %vm393_vm11, 1.0, %v2213_v6 }
 0x20a   :  { %502 = vadd.xlane.f32.xlu0 %v2459_v32  ;;  %533 = vmax.xlane.f32.xlu1 %v2471_v15  ;;  %v2524_v43 = vsel %vm376_vm10, 1.0, %v2213_v6  ;;  %v389_v46 = vmul.f32 %v2521_v42, %v388_v44  ;;  %v2536_v48 = vsel %vm394_vm12, 1.0, %v2213_v6  ;;  %v407_v50 = vmul.f32 %v2527_v45, %v406_v49 }
 0x20b   :  { %v390_v47 = vmul.f32 %v2524_v43, %v388_v44  ;;  %v408_v51 = vmul.f32 %v2536_v48, %v406_v49  ;;  %vm412_vm14 = vcmp.eq.s32.totalorder %v2512_v41, 4294967295  ;;  %v1761_v52 = vsel %vm411_vm13, 1.0, %v2213_v6 }
 0x20c   :  { %v1762_v53 = vsel %vm412_vm14, 1.0, %v2213_v6  ;;  %v409_v55 = vadd.f32 %v407_v50, %v389_v46  ;;  %v425_v57 = vmul.f32 %v1761_v52, %v424_v54  ;;  %vm430_vm1 = vcmp.eq.s32.totalorder %v2512_v41, 0 }
 0x20d   :  { %v410_v56 = vadd.f32 %v408_v51, %v390_v47  ;;  %v426_v58 = vmul.f32 %v1762_v53, %v424_v54  ;;  %v1765_v59 = vsel %vm429_vm15, 1.0, %v2213_v6  ;;  %vm447_vm4 = vcmp.eq.s32.totalorder %v2509_v26, 1 }
 0x20e   :  { %535 = vmax.xlane.f32.xlu0 %v2474_v14  ;;  %537 = vmax.xlane.f32.xlu1 %v2477_v37  ;;  %v427_v61 = vadd.f32 %v425_v57, %v409_v55  ;;  %v1766_v63 = vsel %vm430_vm1, 1.0, %v2213_v6  ;;  %v443_v0 = vmul.f32 %v1765_v59, %v442_v60  ;;  %vm448_vm6 = vcmp.eq.s32.totalorder %v2512_v41, 1 }
 0x20f   :  { %2006 = vmatmul.mubr.bf16.gmra.mrb[12].mxu0 %v1104_v19  ;;  %v428_v62 = vadd.f32 %v426_v58, %v410_v56  ;;  %v444_v1 = vmul.f32 %v1766_v63, %v442_v60  ;;  %v1769_v2 = vsel %vm447_vm4, 1.0, %v2213_v6  ;;  %v1770_v7 = vsel %vm448_vm6, 1.0, %v2213_v6 }
 0x210   :  { %v445_v5 = vadd.f32 %v443_v0, %v427_v61  ;;  %v461_v8 = vmul.f32 %v1769_v2, %v460_v4  ;;  %vm465_vm7 = vcmp.eq.s32.totalorder %v2509_v26, 2  ;;  %v462_v10 = vmul.f32 %v1770_v7, %v460_v4 }
 0x211   :  { %v446_v9 = vadd.f32 %v444_v1, %v428_v62  ;;  %vm466_vm9 = vcmp.eq.s32.totalorder %v2512_v41, 2  ;;  %v1773_v11 = vsel %vm465_vm7, 1.0, %v2213_v6  ;;  %vm483_vm10 = vcmp.eq.s32.totalorder %v2509_v26, 3 }
 0x212   :  { %506 = vadd.xlane.f32.xlu0 %v2468_v36  ;;  %508 = vadd.xlane.f32.xlu1 %v2471_v15  ;;  %v463_v16 = vadd.f32 %v461_v8, %v445_v5  ;;  %v1774_v20 = vsel %vm466_vm9, 1.0, %v2213_v6  ;;  %v479_v28 = vmul.f32 %v1773_v11, %v478_v22  ;;  %vm484_vm11 = vcmp.eq.s32.totalorder %v2512_v41, 3 }
 0x213   :  { %v464_v27 = vadd.f32 %v462_v10, %v446_v9  ;;  %v480_v29 = vmul.f32 %v1774_v20, %v478_v22  ;;  %v1777_v30 = vsel %vm483_vm10, 1.0, %v2213_v6  ;;  %v1778_v33 = vsel %vm484_vm11, 1.0, %v2213_v6 }
 0x214   :  { %v481_v35 = vadd.f32 %v479_v28, %v463_v16  ;;  %v497_v39 = vmul.f32 %v1777_v30, %v496_v34  ;;  %v498_v40 = vmul.f32 %v1778_v33, %v496_v34  ;;  %v383_v19 = vmul.f32 %v2521_v42, %v382_v23 }
 0x215   :  { %v482_v38 = vadd.f32 %v480_v29, %v464_v27  ;;  %v384_v25 = vmul.f32 %v2524_v43, %v382_v23  ;;  %v400_v26 = vstv %s2559_s24  ;;  %v418_v41 = vstv %s2561_s25 }
 0x216   :  { %510 = vadd.xlane.f32.xlu0 %v2474_v14  ;;  %512 = vadd.xlane.f32.xlu1 %v2477_v37  ;;  %v499_v44 = vadd.f32 %v497_v39, %v481_v35  ;;  %v401_v47 = vmul.f32 %v2527_v45, %v400_v26  ;;  %v402_v49 = vmul.f32 %v2536_v48, %v400_v26  ;;  %v436_v54 = vstv %s2568_s26 }
 0x217   :  { %v500_v46 = vadd.f32 %v498_v40, %v482_v38  ;;  %v419_v50 = vmul.f32 %v1761_v52, %v418_v41  ;;  %v420_v51 = vmul.f32 %v1762_v53, %v418_v41  ;;  %v454_v55 = vstv %s2570_s27 }
 0x218   :  { %v403_v57 = vadd.f32 %v401_v47, %v383_v19  ;;  %v404_v58 = vadd.f32 %v402_v49, %v384_v25  ;;  %v437_v42 = vmul.f32 %v1765_v59, %v436_v54  ;;  %v438_v60 = vmul.f32 %v1766_v63, %v436_v54 }
 0x219   :  { %v2074_v56 = vpack.c.bf16 %v500_v46, %v499_v44  ;;  %v472_v43 = vstv %s2577_s4  ;;  %v455_v0 = vmul.f32 %v1769_v2, %v454_v55  ;;  %v456_v1 = vmul.f32 %v1770_v7, %v454_v55  ;;  %v2603_v7 = vpop.f32.mrb[0].mxu0 }
 0x21a   :  { %541 = vmax.xlane.f32.xlu1 %v2490_v18  ;;  %539 = vmax.xlane.f32.xlu0 %v2487_v17  ;;  %v421_v61 = vadd.f32 %v419_v50, %v403_v57  ;;  %v422_v62 = vadd.f32 %v420_v51, %v404_v58  ;;  %v490_v45 = vstv %s2584_s28  ;;  %v473_v4 = vmul.f32 %v1773_v11, %v472_v43  ;;  %v2605_v27 = vpop.f32.mrb[1].mxu0 }
 0x21b   :  { %2075 = vmatpush3.bf16.msra.mxu1 %v2074_v56  ;;  %v474_v53 = vmul.f32 %v1774_v20, %v472_v43  ;;  %v491_v9 = vmul.f32 %v1777_v30, %v490_v45  ;;  %v492_v10 = vmul.f32 %v1778_v33, %v490_v45  ;;  %v2607_v28 = vpop.f32.mrb[2].mxu0  ;;  %v555_v26 = vadd.s32 4294967288, %v2500_v24 }
 0x21c   :  { %2076 = vmatprep.subr.bf16.mxu1 %v2211_v3  ;;  %v439_v48 = vadd.f32 %v437_v42, %v421_v61  ;;  %v440_v52 = vadd.f32 %v438_v60, %v422_v62  ;;  %v2609_v11 = vpop.f32.mrb[3].mxu0  ;;  %v553_v47 = vsub.s32 %v2500_v24, %v2443_v12  ;;  %vm560_vm12 = vcmask 130112  }
 0x21d   :  { %v2611_v20 = vpop.f32.mrb[4].mxu0  ;;  %v558_v46 = vsub.s32 %v555_v26, %v2443_v12  ;;  %vm592_vm13 = vcmask 130048   ;;  %vm1339_vm14 = vcmp.ge.f32.partialorder %v2609_v11, 0.0 }
 0x21e   :  { %516 = vadd.xlane.f32.xlu1 %v2490_v18  ;;  %514 = vadd.xlane.f32.xlu0 %v2487_v17  ;;  %v457_v5 = vadd.f32 %v455_v0, %v439_v48  ;;  %v458_v8 = vadd.f32 %v456_v1, %v440_v52  ;;  %v2613_v29 = vpop.f32.mrb[5].mxu0  ;;  %vm1344_vm15 = vcmp.ge.f32.partialorder %v2611_v20, 0.0 }
 0x21f   :  { %v2615_v30 = vpop.f32.mrb[6].mxu0 }
 0x220   :  { %v475_v16 = vadd.f32 %v473_v4, %v457_v5  ;;  %v476_v59 = vadd.f32 %v474_v53, %v458_v8  ;;  %v2617_v33 = vpop.f32.mrb[7].mxu0  ;;  %vm1345_vm9 = vcmp.ge.f32.partialorder %v2615_v30, 0.0 }
 0x221   :  { %vm1343_vm10 = vcmp.ge.f32.partialorder %v2617_v33, 0.0 }
 0x222   :  { %v2597_v63 = vadd.f32 %v491_v9, %v475_v16  ;;  %v2599_v22 = vadd.f32 %v492_v10, %v476_v59 }
 0x224   :  { %v2077_v2 = vpack.c.bf16 %v2599_v22, %v2597_v63  ;;  %v850_v63 = vld [vmem:[%s2956_s5 + $0x10] sm:$0xff]  ;;  %v851_v22 = vld [vmem:[%s2956_s5 + $0x18] sm:$0xff] }
 0x28f   :  { %v505_v34 = vpop.xlane.xlu1 %504  ;;  %v528_v23 = vpop.xlane.xlu0 %527 }
 0x290   :  { %v554_v60 = vrot.slane %v528_v23, %v553_v47  ;;  %v520_v1 = vmul.f32 0.0078125, %v505_v34 }
 0x293   :  { %v530_v35 = vpop.xlane.xlu0 %529  ;;  %v532_v38 = vpop.xlane.xlu1 %531 }
 0x294   :  { %v559_v50 = vrot.slane %v530_v35, %v558_v46  ;;  %v565_v57 = vrot.slane %v532_v38, %v553_v47 }
 0x296   :  { %v561_v45 = vsel %vm560_vm12, %v559_v50, %v554_v60 }
 0x297   :  { %v503_v39 = vpop.xlane.xlu0 %502  ;;  %v534_v40 = vpop.xlane.xlu1 %533 }
 0x298   :  { %v569_v49 = vrot.slane %v534_v40, %v558_v46  ;;  %v519_v62 = vmul.f32 0.0078125, %v503_v39  ;;  %v680_v40 = vrot.slane %v520_v1, %v558_v46  ;;  %v857_v1 = vld [vmem:[%s2956_s5 + $0x48] sm:$0xff] }
 0x29a   :  { %v570_v0 = vsel %vm560_vm12, %v569_v49, %v565_v57  ;;  %v676_v59 = vrot.slane %v519_v62, %v553_v47 }
 0x29b   :  { %v536_v19 = vpop.xlane.xlu0 %535  ;;  %v538_v25 = vpop.xlane.xlu1 %537  ;;  %v589_v9 = vsel %vm123_vm2, %v570_v0, %v561_v45  ;;  %v856_v0 = vld [vmem:[%s2956_s5 + $0x40] sm:$0xff] }
 0x29c   :  { %v574_v51 = vrot.slane %v536_v19, %v553_v47  ;;  %v578_v54 = vrot.slane %v538_v25, %v558_v46  ;;  %v681_v50 = vsel %vm560_vm12, %v680_v40, %v676_v59  ;;  %v844_v45 = vld [vmem:[%s2952_s1] sm:$0x1]  ;;  %v861_v59 = vld [vmem:[%s2956_s5 + $0x68] sm:$0xff] }
 0x29e   :  { %v579_v24 = vsel %vm560_vm12, %v578_v54, %v574_v51 }
 0x29f   :  { %v507_v41 = vpop.xlane.xlu0 %506  ;;  %v509_v44 = vpop.xlane.xlu1 %508  ;;  %v590_v23 = vsel %vm125_vm3, %v579_v24, %v589_v9  ;;  %v2092_v24 = vpack.c.bf16 %v857_v1, %v856_v0 }
 0x2a0   :  { %v521_v58 = vmul.f32 0.0078125, %v507_v41  ;;  %v522_v42 = vmul.f32 0.0078125, %v509_v44  ;;  %v848_v41 = vld [vmem:[%s2956_s5] sm:$0xff]  ;;  %v849_v44 = vld [vmem:[%s2956_s5 + $0x8] sm:$0xff] }
 0x2a2   :  { %v685_v4 = vrot.slane %v521_v58, %v553_v47  ;;  %v689_v53 = vrot.slane %v522_v42, %v558_v46  ;;  %v853_v42 = vld [vmem:[%s2956_s5 + $0x28] sm:$0xff] }
 0x2a3   :  { %v511_v55 = vpop.xlane.xlu0 %510  ;;  %v513_v56 = vpop.xlane.xlu1 %512 }
 0x2a4   :  { %v523_v43 = vmul.f32 0.0078125, %v511_v55  ;;  %v524_v61 = vmul.f32 0.0078125, %v513_v56  ;;  %v690_v19 = vsel %vm560_vm12, %v689_v53, %v685_v4  ;;  %v2080_v56 = vpack.c.bf16 %v849_v44, %v848_v41  ;;  %v847_v4 = vld [vmem:[%s2952_s1 + $0x3] sm:$0x1]  ;;  %v858_v53 = vld [vmem:[%s2956_s5 + $0x50] sm:$0xff] }
 0x2a5   :  { %v709_v55 = vsel %vm123_vm2, %v690_v19, %v681_v50  ;;  %v1370_v41 = vmul.f32 0.01, %v2605_v27  ;;  %vm1340_vm2 = vcmp.ge.f32.partialorder %v2603_v7, 0.0  ;;  %v1373_v44 = vmul.f32 0.01, %v2607_v28 }
 0x2a6   :  { %v694_v10 = vrot.slane %v523_v43, %v553_v47  ;;  %v698_v16 = vrot.slane %v524_v61, %v558_v46  ;;  %v854_v43 = vld [vmem:[%s2956_s5 + $0x30] sm:$0xff]  ;;  %v855_v61 = vld [vmem:[%s2956_s5 + $0x38] sm:$0xff] }
 0x2a7   :  { %v542_v48 = vpop.xlane.xlu1 %541  ;;  %v540_v52 = vpop.xlane.xlu0 %539  ;;  %v2089_v62 = vpack.c.bf16 %v855_v61, %v854_v43 }
 0x2a8   :  { %v587_v5 = vrot.slane %v542_v48, %v558_v46  ;;  %v583_v8 = vrot.slane %v540_v52, %v553_v47  ;;  %v699_v49 = vsel %vm560_vm12, %v698_v16, %v694_v10  ;;  %v845_v48 = vld [vmem:[%s2952_s1 + $0x1] sm:$0x1]  ;;  %v846_v52 = vld [vmem:[%s2952_s1 + $0x2] sm:$0x1] }
 0x2a9   :  { %v710_v58 = vsel %vm125_vm3, %v699_v49, %v709_v55  ;;  %v869_v9 = vcombine.low %v846_v52, %v847_v4  ;;  %v860_v16 = vld [vmem:[%s2956_s5 + $0x60] sm:$0xff]  ;;  %vm1338_vm3 = vcmp.ge.f32.partialorder %v2605_v27, 0.0 }
 0x2aa   :  { %v588_v34 = vsel %vm560_vm12, %v587_v5, %v583_v8  ;;  %v859_v5 = vld [vmem:[%s2956_s5 + $0x58] sm:$0xff]  ;;  %v868_v8 = vcombine.low %v844_v45, %v845_v48  ;;  %v1402_v50 = vsel %vm1338_vm3, %v2605_v27, %v1370_v41  ;;  %v1375_v45 = vmul.f32 0.01, %v2617_v33 }
 0x2ab   :  { %v517_v35 = vpop.xlane.xlu1 %516  ;;  %v515_v38 = vpop.xlane.xlu0 %514  ;;  %v591_v39 = vsel %vm127_vm5, %v588_v34, %v590_v23  ;;  %v2095_v10 = vpack.c.bf16 %v859_v5, %v858_v53  ;;  %v883_v34 = vrot.slane %v869_v9, %v2446_v13  ;;  %v1434_v55 = vmul.f32 0.4, %v1402_v50 }
 0x2ac   :  { %v526_v25 = vmul.f32 0.0078125, %v517_v35  ;;  %v525_v26 = vmul.f32 0.0078125, %v515_v38  ;;  %1928 = vmatmul.mubr.msk.f32.vlgmr.msra.gmra.mrb[4].mxu1 %vm592_vm13, %v591_v39  ;;  %v876_v23 = vrot.slane %v868_v8, %v2446_v13  ;;  %v2098_v35 = vpack.c.bf16 %v861_v59, %v860_v16  ;;  %v862_v38 = vld [vmem:[%s2956_s5 + $0x70] sm:$0xff]  ;;  %v863_v39 = vld [vmem:[%s2956_s5 + $0x78] sm:$0xff] }
 0x2ad   :  { %2078 = vmatpush3.bf16.msra.mxu1 %v2077_v2  ;;  %1934 = vmatprep.mubr.msk.f32.mxu1 %vm2212_vm0, %v2213_v6  ;;  %v2101_v19 = vpack.c.bf16 %v863_v39, %v862_v38 }
 0x2ae   :  { %v707_v51 = vrot.slane %v526_v25, %v558_v46  ;;  %v703_v54 = vrot.slane %v525_v26, %v553_v47  ;;  %2079 = vmatprep.subr.bf16.mxu1 %v2211_v3  ;;  %v2083_v46 = vpack.c.bf16 %v851_v22, %v850_v63  ;;  %v852_v47 = vld [vmem:[%s2956_s5 + $0x20] sm:$0xff]  ;;  %v884_v40 = vcombine.low %v876_v23, %v883_v34 }
 0x2af   :  { %v2086_v60 = vpack.c.bf16 %v853_v42, %v852_v47  ;;  %v1372_v26 = vmul.f32 0.01, %v2603_v7 }
 0x2b0   :  { %v708_v57 = vsel %vm560_vm12, %v707_v51, %v703_v54  ;;  %v891_v25 = vrot.slane %v884_v40, %v2446_v13 }
 0x2b1   :  { %v711_v2 = vsel %vm127_vm5, %v708_v57, %v710_v58  ;;  %vm1341_vm5 = vcmp.ge.f32.partialorder %v2607_v28, 0.0  ;;  %v1404_v49 = vsel %vm1340_vm2, %v2603_v7, %v1372_v26  ;;  %v1374_v7 = vmul.f32 0.01, %v2613_v29 }
 0x2b2   :  { %1935 = vmatmul.mubr.msk.f32.vlgmr.msra.gmra.mrb[6].mxu1 %vm592_vm13, %v711_v2  ;;  %v1405_v51 = vsel %vm1341_vm5, %v2607_v28, %v1373_v44  ;;  %v1436_v54 = vmul.f32 0.4, %v1404_v49 }
 0x2b3   :  { %2081 = vmatpush3.bf16.msra.mxu1 %v2080_v56  ;;  %1969 = vmatprep.mubr.msk.f32.mxu1 %vm2212_vm0, %v2213_v6  ;;  %v1437_v57 = vmul.f32 0.4, %v1405_v51 }
 0x2b4   :  { %2082 = vmatprep.subr.bf16.mxu1 %v2211_v3 }
 0x2b7   :  { %2084 = vmatpush3.bf16.msra.mxu1 %v2083_v46  ;;  %v1377_v46 = vmul.f32 0.01, %v2615_v30 }
 0x2b8   :  { %2085 = vmatprep.subr.bf16.mxu1 %v2211_v3 }
 0x2bb   :  { %2087 = vmatpush3.bf16.msra.mxu1 %v2086_v60 }
 0x2bc   :  { %2088 = vmatprep.subr.bf16.mxu1 %v2211_v3 }
 0x2bf   :  { %2090 = vmatpush3.bf16.msra.mxu1 %v2089_v62 }
 0x2c0   :  { %2091 = vmatprep.subr.bf16.mxu1 %v2211_v3 }
 0x2c3   :  { %2093 = vmatpush3.bf16.msra.mxu1 %v2092_v24 }
 0x2c4   :  { %2094 = vmatprep.subr.bf16.mxu1 %v2211_v3 }
 0x2c7   :  { %2096 = vmatpush3.bf16.msra.mxu1 %v2095_v10 }
 0x2c8   :  { %2097 = vmatprep.subr.bf16.mxu1 %v2211_v3 }
 0x2cb   :  { %2099 = vmatpush3.bf16.msra.mxu1 %v2098_v35  ;;  %v1407_v35 = vsel %vm1343_vm10, %v2617_v33, %v1375_v45 }
 0x2cc   :  { %2100 = vmatprep.subr.bf16.mxu1 %v2211_v3  ;;  %v1371_v3 = vmul.f32 0.01, %v2609_v11  ;;  %v1439_v44 = vmul.f32 0.4, %v1407_v35 }
 0x2ce   :  { %v1403_v56 = vsel %vm1339_vm14, %v2609_v11, %v1371_v3 }
 0x2cf   :  { %2102 = vmatpush3.bf16.msra.mxu1 %v2101_v19  ;;  %v1435_v22 = vmul.f32 0.4, %v1403_v56 }
 0x2d0   :  { %1972 = vmatprep.subr.mxu1 %v2213_v6 }
 0x2d2   :  { %1970 = vmatmul.mubr.f32.vlgmr.msra.gmra.mrb[8].mxu1 %v891_v25 }
 0x2d3   :  { %1974 = vmatprep.mubr.msk.f32.mxu1 %vm2212_vm0, %v2213_v6  ;;  %v1376_v6 = vmul.f32 0.01, %v2611_v20  ;;  %vm1342_vm0 = vcmp.ge.f32.partialorder %v2613_v29, 0.0 }
 0x2d4   :  { %v1406_v4 = vsel %vm1342_vm0, %v2613_v29, %v1374_v7 }
 0x2d5   :  { %v1408_v62 = vsel %vm1344_vm15, %v2611_v20, %v1376_v6  ;;  %v1409_v20 = vsel %vm1345_vm9, %v2615_v30, %v1377_v46  ;;  %v1438_v34 = vmul.f32 0.4, %v1406_v4  ;;  %v964_v6 = vld [vmem:[%s2957_s6] sm:$0xff] }
 0x2d6   :  { %v1440_v10 = vmul.f32 0.4, %v1408_v62  ;;  %v1441_v39 = vmul.f32 0.4, %v1409_v20  ;;  %1973 = vmatpush3.msra.mxu1 %v964_v6 }
 0x2da   :  { %v2003_v58 = vpop.f32.mrb[8].mxu0 }
 0x2db   :  { %vm1348_vm1 = vcmp.ge.f32.partialorder %v2003_v58, 0.0  ;;  %v1380_v27 = vmul.f32 0.01, %v2003_v58  ;;  %v1243_v63 = vpop.f32.mrb[9].mxu0 }
 0x2dc   :  { %vm1346_vm4 = vcmp.ge.f32.partialorder %v1243_v63, 0.0  ;;  %v1378_v28 = vmul.f32 0.01, %v1243_v63  ;;  %v2004_v2 = vpop.f32.mrb[10].mxu0 }
 0x2dd   :  { %v1412_v11 = vsel %vm1348_vm1, %v2003_v58, %v1380_v27  ;;  %vm1349_vm6 = vcmp.ge.f32.partialorder %v2004_v2, 0.0  ;;  %v1381_v47 = vmul.f32 0.01, %v2004_v2  ;;  %v1246_v42 = vpop.f32.mrb[11].mxu0 }
 0x2de   :  { %v1444_v60 = vmul.f32 0.2, %v1412_v11  ;;  %v1410_v43 = vsel %vm1346_vm4, %v1243_v63, %v1378_v28  ;;  %vm1347_vm7 = vcmp.ge.f32.partialorder %v1246_v42, 0.0  ;;  %v1379_v61 = vmul.f32 0.01, %v1246_v42 }
 0x2df   :  { %v1442_v0 = vmul.f32 0.2, %v1410_v43  ;;  %v1413_v1 = vsel %vm1349_vm6, %v2004_v2, %v1381_v47  ;;  %v784_v63 = vstv %s1781_s3  ;;  %v805_v43 = vsub.s32 1, %v2443_v12 }
 0x2e0   :  { %v2742_v24 = vadd.f32 %v1444_v60, %v1436_v54  ;;  %v1445_v48 = vmul.f32 0.2, %v1413_v1  ;;  %v1411_v52 = vsel %vm1347_vm7, %v1246_v42, %v1379_v61  ;;  %v816_v61 = vsub.s32 2, %v2443_v12 }
 0x2e1   :  { %v2748_v53 = vadd.f32 %v1442_v0, %v1434_v55  ;;  %v1443_v5 = vmul.f32 0.2, %v1411_v52  ;;  %v827_v52 = vsub.s32 3, %v2443_v12 }
 0x2e2   :  { %v2751_v8 = vadd.f32 %v1445_v48, %v1437_v57  ;;  %v2007_v9 = vpop.f32.mrb[12].mxu0 }
 0x2e3   :  { %v2753_v16 = vadd.f32 %v1443_v5, %v1435_v22  ;;  %vm1352_vm11 = vcmp.ge.f32.partialorder %v2007_v9, 0.0  ;;  %v1384_v59 = vmul.f32 0.01, %v2007_v9  ;;  %v1259_v23 = vpop.f32.mrb[13].mxu0 }
 0x2e4   :  { %vm1350_vm12 = vcmp.ge.f32.partialorder %v1259_v23, 0.0  ;;  %v1382_v29 = vmul.f32 0.01, %v1259_v23  ;;  %v2008_v38 = vpop.f32.mrb[14].mxu0 }
 0x2e5   :  { %v1416_v40 = vsel %vm1352_vm11, %v2007_v9, %v1384_v59  ;;  %vm1353_vm13 = vcmp.ge.f32.partialorder %v2008_v38, 0.0  ;;  %v1385_v19 = vmul.f32 0.01, %v2008_v38  ;;  %v1262_v30 = vpop.f32.mrb[15].mxu0 }
 0x2e6   :  { %v1448_v25 = vmul.f32 0.2, %v1416_v40  ;;  %v1414_v26 = vsel %vm1350_vm12, %v1259_v23, %v1382_v29  ;;  %vm1351_vm2 = vcmp.ge.f32.partialorder %v1262_v30, 0.0  ;;  %v1383_v41 = vmul.f32 0.01, %v1262_v30 }
 0x2e7   :  { %v1446_v3 = vmul.f32 0.2, %v1414_v26  ;;  %v1417_v49 = vsel %vm1353_vm13, %v2008_v38, %v1385_v19 }
 0x2e8   :  { %v2756_v50 = vadd.f32 %v1448_v25, %v1440_v10  ;;  %v1449_v51 = vmul.f32 0.2, %v1417_v49  ;;  %v1415_v54 = vsel %vm1351_vm2, %v1262_v30, %v1383_v41 }
 0x2e9   :  { %v2758_v33 = vadd.f32 %v1446_v3, %v1438_v34  ;;  %v1447_v55 = vmul.f32 0.2, %v1415_v54 }
 0x2ea   :  { %v2760_v56 = vadd.f32 %v1449_v51, %v1441_v39 }
 0x2eb   :  { %v2762_v57 = vadd.f32 %v1447_v55, %v1439_v44 }
 0x37f   :  { %v661_v58 = vpop.f32.mrb[4].mxu1 }
 0x380   :  { %v1929_v7 = vpop.f32.mrb[5].mxu1 }
 0x381   :  { %v2121_v7 = vld [vmem:[%s2959_s8 + $0x8] sm:$0xff]  }
 0x385   :  { %v780_v27 = vpop.f32.mrb[6].mxu1 }
 0x386   :  { %v781_v22 = vadd.f32 %v780_v27, %v661_v58  ;;  %v1936_v28 = vpop.f32.mrb[7].mxu1  ;;  %v2120_v58 = vld [vmem:[%s2959_s8] sm:$0xff]   ;;  %v2122_v27 = vld [vmem:[%s2959_s8 + $0x10] sm:$0xff]  }
 0x387   :  { %2025 = vmatprep.subr.bf16.mxu0 %v2120_v58  ;;  %v2124_v28 = vld [vmem:[%s2959_s8 + $0x20] sm:$0xff]  }
 0x388   :  { %v785_v2 = vadd.f32 %v784_v63, %v781_v22  ;;  %2026 = vmatpush3.bf16.msra.mxu0 %v2120_v58  ;;  %v2123_v63 = vld [vmem:[%s2959_s8 + $0x18] sm:$0xff]  }
 0x389   :  { %2027 = vmatprep.subr.bf16.mxu0 %v2121_v7 }
 0x38a   :  { %v1784_v46 = vmul.f32 -1.442695, %v785_v2 }
 0x38c   :  { %2132 = vpow2.f32 %v1784_v46  ;;  %2028 = vmatpush3.bf16.msra.mxu0 %v2121_v7 }
 0x38d   :  { %2029 = vmatprep.subr.bf16.mxu0 %v2122_v27 }
 0x390   :  { %2030 = vmatpush3.bf16.msra.mxu0 %v2122_v27 }
 0x391   :  { %2031 = vmatprep.subr.bf16.mxu0 %v2123_v63 }
 0x394   :  { %2032 = vmatpush3.bf16.msra.mxu0 %v2123_v63 }
 0x395   :  { %2033 = vmatprep.subr.bf16.mxu0 %v2124_v28 }
 0x396   :  { %v2133_v11 = vpop.eup %2132 }
 0x397   :  { %v789_v47 = vadd.f32 1.0, %v2133_v11 }
 0x398   :  { %2034 = vmatpush3.bf16.msra.mxu0 %v2124_v28 }
 0x399   :  { %2134 = vrcp.f32 %v789_v47  ;;  %v2125_v47 = vld [vmem:[%s2959_s8 + $0x28] sm:$0xff]  }
 0x39a   :  { %2035 = vmatprep.subr.bf16.mxu0 %v2125_v47 }
 0x39c   :  { %2036 = vmatpush3.bf16.msra.mxu0 %v2125_v47 }
 0x3a3   :  { %v2135_v42 = vpop.eup %2134 }
 0x3a4   :  { %v795_v60 = vrot.slane %v2135_v42, %v2450_v21  ;;  %v806_v45 = vrot.slane %v2135_v42, %v805_v43  ;;  %v817_v48 = vrot.slane %v2135_v42, %v816_v61  ;;  %v828_v4 = vrot.slane %v2135_v42, %v827_v52  ;;  %v2140_v61 = vld [vmem:[%s2951_s0] sm:$0xff] }
 0x3a5   :  { %v959_v62 = vpop.f32.mrb[8].mxu1 }
 0x3a6   :  { %v963_v0 = vmax.f32 %v959_v62, 0.0  ;;  %v1971_v1 = vpop.f32.mrb[9].mxu1  ;;  %801 = vbcast.lane.b32.xlu1 %v795_v60, 264  ;;  %797 = vbcast.lane.b32.xlu0 %v795_v60, 256 }
 0x3a8   :  { %1975 = vmatmul.mubr.msk.f32.vlgmr.msra.gmra.mrb[10].mxu1 %vm231_vm8, %v963_v0  ;;  %v2141_v0 = vld [vmem:[%s2951_s0 + $0x8] sm:$0xff] }
 0x3aa   :  { %808 = vbcast.lane.b32.xlu1 %v806_v45, 256  ;;  %819 = vbcast.lane.b32.xlu0 %v817_v48, 256 }
 0x3ae   :  { %812 = vbcast.lane.b32.xlu1 %v806_v45, 264  ;;  %830 = vbcast.lane.b32.xlu0 %v828_v4, 256 }
 0x3b2   :  { %823 = vbcast.lane.b32.xlu1 %v817_v48, 264 }
 0x3b6   :  { %834 = vbcast.lane.b32.xlu1 %v828_v4, 264 }
 0x418   :  { %v802_v5 = vpop.permute.xlu1 %801  ;;  %v798_v20 = vpop.permute.xlu0 %797 }
 0x419   :  { %v2773_v9 = vmul.f32 %v802_v5, %v2456_v31  ;;  %v2776_v10 = vmul.f32 %v798_v20, %v2459_v32  ;;  %v2142_v5 = vld [vmem:[%s2951_s0 + $0x10] sm:$0xff] }
 0x41b   :  { %v1105_v59 = vpack.c.bf16 %v2773_v9, %v2776_v10 }
 0x41c   :  { %v809_v23 = vpop.permute.xlu1 %808  ;;  %v820_v12 = vpop.permute.xlu0 %819 }
 0x41d   :  { %2009 = vmatprep.mubr.bf16.mxu0 %v1105_v59  ;;  %v2781_v35 = vmul.f32 %v809_v23, %v2468_v36  ;;  %v2789_v40 = vmul.f32 %v820_v12, %v2474_v14  ;;  %v2143_v59 = vld [vmem:[%s2951_s0 + $0x18] sm:$0xff]  ;;  %v2144_v12 = vld [vmem:[%s2951_s0 + $0x20] sm:$0xff] }
 0x420   :  { %v813_v34 = vpop.permute.xlu1 %812  ;;  %v831_v30 = vpop.permute.xlu0 %830 }
 0x421   :  { %v2784_v29 = vmul.f32 %v813_v34, %v2471_v15  ;;  %v2797_v41 = vmul.f32 %v831_v30, %v2487_v17 }
 0x423   :  { %v1106_v38 = vpack.c.bf16 %v2784_v29, %v2781_v35 }
 0x424   :  { %v824_v39 = vpop.permute.xlu1 %823 }
 0x425   :  { %v2792_v19 = vmul.f32 %v824_v39, %v2477_v37  ;;  %2010 = vmatmul.mubr.bf16.gmra.mrb[16].mxu0 %v1106_v38  ;;  %v2145_v38 = vld [vmem:[%s2951_s0 + $0x28] sm:$0xff] }
 0x427   :  { %v1107_v25 = vpack.c.bf16 %v2792_v19, %v2789_v40 }
 0x428   :  { %v835_v26 = vpop.permute.xlu1 %834 }
 0x429   :  { %v2800_v44 = vmul.f32 %v835_v26, %v2490_v18  ;;  %2013 = vmatprep.mubr.bf16.mxu0 %v1107_v25 }
 0x42b   :  { %v1108_v3 = vpack.c.bf16 %v2800_v44, %v2797_v41 }
 0x42d   :  { %2014 = vmatmul.mubr.bf16.gmra.mrb[20].mxu0 %v1108_v3  ;;  %v2146_v3 = vld [vmem:[%s2951_s0 + $0x30] sm:$0xff] }
 0x47b   :  { %v1034_v49 = vpop.f32.mrb[10].mxu1 }
 0x47c   :  { %v1786_v51 = vmul.f32 -1.442695, %v1034_v49  ;;  %v1976_v54 = vpop.f32.mrb[11].mxu1 }
 0x47e   :  { %2136 = vpow2.f32 %v1786_v51  ;;  %v2147_v51 = vld [vmem:[%s2951_s0 + $0x38] sm:$0xff] }
 0x488   :  { %v2137_v55 = vpop.eup %2136 }
 0x489   :  { %v1041_v6 = vadd.f32 1.0, %v2137_v55 }
 0x48b   :  { %2138 = vrcp.f32 %v1041_v6 }
 0x495   :  { %v2139_v22 = vpop.eup %2138 }
 0x496   :  { %v1051_v2 = vrot.slane %v2139_v22, %v2446_v13 }
 0x498   :  { %v1059_v46 = vrot.slane %v1051_v2, %v2446_v13  ;;  %v1052_v11 = vcombine.high %v1051_v2, %v1051_v2 }
 0x49a   :  { %v1072_v42 = vrot.slane %v1059_v46, %v2450_v21  ;;  %v1066_v60 = vrot.slane %v1052_v11, %v2446_v13  ;;  %v1067_v43 = vcombine.high %v1059_v46, %v1059_v46  ;;  %v2126_v13 = vld [vmem:[%s2959_s8 + $0x30] sm:$0xff]  }
 0x49b   :  { %2037 = vmatprep.subr.bf16.mxu0 %v2126_v13 }
 0x49c   :  { %v2829_v62 = vmul.f32 %v2140_v61, %v1072_v42  ;;  %v2834_v1 = vmul.f32 %v2141_v0, %v1072_v42  ;;  %v1076_v45 = vrot.slane %v1066_v60, %v2450_v21  ;;  %v1080_v48 = vrot.slane %v1067_v43, %v2450_v21  ;;  %2038 = vmatpush3.bf16.msra.mxu0 %v2126_v13 }
 0x49d   :  { %v1068_v52 = vcombine.high %v1066_v60, %v1066_v60 }
 0x49e   :  { %v1109_v4 = vpack.c.bf16 %v2834_v1, %v2829_v62  ;;  %v2846_v20 = vmul.f32 %v2142_v5, %v1076_v45  ;;  %v2851_v23 = vmul.f32 %v2143_v59, %v1076_v45  ;;  %v2856_v34 = vmul.f32 %v2144_v12, %v1080_v48 }
 0x49f   :  { %v2861_v39 = vmul.f32 %v2145_v38, %v1080_v48  ;;  %v1084_v26 = vrot.slane %v1068_v52, %v2450_v21  ;;  %v2127_v48 = vld [vmem:[%s2959_s8 + $0x38] sm:$0xff]   ;;  %s2215_s8 = smov [#allocation5]  }
 0x4a0   :  { %2017 = vmatprep.mubr.bf16.mxu0 %v1109_v4  ;;  %v1110_v30 = vpack.c.bf16 %v2851_v23, %v2846_v20  ;;  %2039 = vmatprep.subr.bf16.mxu0 %v2127_v48  ;;  %s1724_s26 = sshll.u32 %s2215_s8, 4  ;;  %s1725_s26 = int_to_ptr.vmem [resolvable:$true] %s1724_s26 }
 0x4a1   :  { %v1111_v25 = vpack.c.bf16 %v2861_v39, %v2856_v34  ;;  %v2871_v49 = vmul.f32 %v2146_v3, %v1084_v26  ;;  %v2876_v54 = vmul.f32 %v2147_v51, %v1084_v26  ;;  %2040 = vmatpush3.bf16.msra.mxu0 %v2127_v48  ;;  %s2160_s27 = scalar_lea.vmem %s1725_s26, 1024  ;;  %p2165_p6 = scmp.lt.s32.totalorder %s1725_s26, %s1725_s26 }
 0x4a2   :  { %2018 = vmatmul.mubr.bf16.gmra.mrb[24].mxu0 %v1110_v30  ;;  %p2161_p5 = scmp.ne.s32.totalorder %s1725_s26, %s2160_s27  ;;  %p2166_p7 = scmp.lt.s32.totalorder %s2160_s27, %s2160_s27 }
 0x4a3   :  { %2021 = vmatprep.mubr.bf16.mxu0 %v1111_v25  ;;  %v1112_v55 = vpack.c.bf16 %v2876_v54, %v2871_v49 }
 0x4a4   :  { %p2167_p8 = por %p2166_p7, %p2165_p6 }
 0x4a6   :  { %p2168_p9 = pnand %p2167_p8, %p2161_p5 }
 0x4aa   :  { %2022 = vmatmul.mubr.bf16.gmra.mrb[28].mxu0 %v1112_v55 }
 0x4f8   :  { %v2011_v21 = vpop.f32.mrb[16].mxu0 }
 0x4f9   :  { %vm1356_vm8 = vcmp.ge.f32.partialorder %v2011_v21, 0.0  ;;  %v1388_v6 = vmul.f32 0.01, %v2011_v21  ;;  %v1275_v58 = vpop.f32.mrb[17].mxu0 }
 0x4fa   :  { %vm1354_vm3 = vcmp.ge.f32.partialorder %v1275_v58, 0.0  ;;  %v1386_v7 = vmul.f32 0.01, %v1275_v58  ;;  %v2012_v27 = vpop.f32.mrb[18].mxu0 }
 0x4fb   :  { %v1420_v63 = vsel %vm1356_vm8, %v2011_v21, %v1388_v6  ;;  %vm1357_vm5 = vcmp.ge.f32.partialorder %v2012_v27, 0.0  ;;  %v1389_v22 = vmul.f32 0.01, %v2012_v27  ;;  %v1278_v28 = vpop.f32.mrb[19].mxu0 }
 0x4fc   :  { %v1460_v2 = vmul.f32 0.2, %v1420_v63  ;;  %v1418_v46 = vsel %vm1354_vm3, %v1275_v58, %v1386_v7  ;;  %vm1355_vm14 = vcmp.ge.f32.partialorder %v1278_v28, 0.0  ;;  %v1387_v11 = vmul.f32 0.01, %v1278_v28 }
 0x4fd   :  { %v1458_v47 = vmul.f32 0.2, %v1418_v46  ;;  %v1421_v42 = vsel %vm1357_vm5, %v2012_v27, %v1389_v22 }
 0x4fe   :  { %v1468_v60 = vadd.f32 %v1460_v2, %v2742_v24  ;;  %v1461_v43 = vmul.f32 0.2, %v1421_v42  ;;  %v1419_v61 = vsel %vm1355_vm14, %v1278_v28, %v1387_v11 }
 0x4ff   :  { %v1466_v0 = vadd.f32 %v1458_v47, %v2748_v53  ;;  %v1459_v45 = vmul.f32 0.2, %v1419_v61 }
 0x500   :  { %v1469_v52 = vadd.f32 %v1461_v43, %v2751_v8  ;;  %v2015_v13 = vpop.f32.mrb[20].mxu0 }
 0x501   :  { %v1467_v4 = vadd.f32 %v1459_v45, %v2753_v16  ;;  %vm1360_vm15 = vcmp.ge.f32.partialorder %v2015_v13, 0.0  ;;  %v1392_v5 = vmul.f32 0.01, %v2015_v13  ;;  %v1291_v59 = vpop.f32.mrb[21].mxu0 }
 0x502   :  { %vm1358_vm0 = vcmp.ge.f32.partialorder %v1291_v59, 0.0  ;;  %v1390_v24 = vmul.f32 0.01, %v1291_v59  ;;  %v2016_v12 = vpop.f32.mrb[22].mxu0 }
 0x503   :  { %v1424_v38 = vsel %vm1360_vm15, %v2015_v13, %v1392_v5  ;;  %vm1361_vm1 = vcmp.ge.f32.partialorder %v2016_v12, 0.0  ;;  %v1393_v53 = vmul.f32 0.01, %v2016_v12  ;;  %v1294_v30 = vpop.f32.mrb[23].mxu0 }
 0x504   :  { %v1464_v25 = vmul.f32 0.2, %v1424_v38  ;;  %v1422_v26 = vsel %vm1358_vm0, %v1291_v59, %v1390_v24  ;;  %vm1359_vm4 = vcmp.ge.f32.partialorder %v1294_v30, 0.0  ;;  %v1391_v3 = vmul.f32 0.01, %v1294_v30 }
 0x505   :  { %v1462_v8 = vmul.f32 0.2, %v1422_v26  ;;  %v1425_v51 = vsel %vm1361_vm1, %v2016_v12, %v1393_v53 }
 0x506   :  { %v1472_v16 = vadd.f32 %v1464_v25, %v2756_v50  ;;  %v1465_v55 = vmul.f32 0.2, %v1425_v51  ;;  %v1423_v21 = vsel %vm1359_vm4, %v1294_v30, %v1391_v3 }
 0x507   :  { %v1470_v6 = vadd.f32 %v1462_v8, %v2758_v33  ;;  %v1463_v58 = vmul.f32 0.2, %v1423_v21 }
 0x508   :  { %v1473_v7 = vadd.f32 %v1465_v55, %v2760_v56 }
 0x509   :  { %v1471_v27 = vadd.f32 %v1463_v58, %v2762_v57 }
 0x575   :  { %v2019_v63 = vpop.f32.mrb[24].mxu0 }
 0x576   :  { %vm1364_vm6 = vcmp.ge.f32.partialorder %v2019_v63, 0.0  ;;  %v1396_v22 = vmul.f32 0.01, %v2019_v63  ;;  %v1307_v28 = vpop.f32.mrb[25].mxu0 }
 0x577   :  { %vm1362_vm7 = vcmp.ge.f32.partialorder %v1307_v28, 0.0  ;;  %v1394_v2 = vmul.f32 0.01, %v1307_v28  ;;  %v2020_v46 = vpop.f32.mrb[26].mxu0 }
 0x578   :  { %v1428_v11 = vsel %vm1364_vm6, %v2019_v63, %v1396_v22  ;;  %vm1365_vm9 = vcmp.ge.f32.partialorder %v2020_v46, 0.0  ;;  %v1397_v47 = vmul.f32 0.01, %v2020_v46  ;;  %v1310_v50 = vpop.f32.mrb[27].mxu0 }
 0x579   :  { %v1476_v42 = vmul.f32 0.2, %v1428_v11  ;;  %v1426_v43 = vsel %vm1362_vm7, %v1307_v28, %v1394_v2  ;;  %vm1363_vm10 = vcmp.ge.f32.partialorder %v1310_v50, 0.0  ;;  %v1395_v33 = vmul.f32 0.01, %v1310_v50 }
 0x57a   :  { %v1474_v61 = vmul.f32 0.2, %v1426_v43  ;;  %v1429_v45 = vsel %vm1365_vm9, %v2020_v46, %v1397_v47 }
 0x57b   :  { %v1484_v56 = vadd.f32 %v1476_v42, %v1468_v60  ;;  %v1477_v48 = vmul.f32 0.2, %v1429_v45  ;;  %v1427_v57 = vsel %vm1363_vm10, %v1310_v50, %v1395_v33 }
 0x57c   :  { %v1482_v13 = vadd.f32 %v1474_v61, %v1466_v0  ;;  %v1475_v5 = vmul.f32 0.2, %v1427_v57 }
 0x57d   :  { %1705 = vst [vmem:[#allocation5 + $0x10] sm:$0xff] %v1484_v56  ;;  %v1485_v59 = vadd.f32 %v1477_v48, %v1469_v52  ;;  %v2023_v24 = vpop.f32.mrb[28].mxu0 }
 0x57e   :  { %1703 = vst [vmem:[#allocation5] sm:$0xff] %v1482_v13  ;;  %v1483_v12 = vadd.f32 %v1475_v5, %v1467_v4  ;;  %vm1368_vm11 = vcmp.ge.f32.partialorder %v2023_v24, 0.0  ;;  %v1400_v38 = vmul.f32 0.01, %v2023_v24  ;;  %v1323_v53 = vpop.f32.mrb[29].mxu0 }
 0x57f   :  { %v1491_v30 = vpack.c.bf16 %v1485_v59, %v1484_v56  ;;  %1706 = vst [vmem:[#allocation5 + $0x18] sm:$0xff] %v1485_v59  ;;  %vm1366_vm12 = vcmp.ge.f32.partialorder %v1323_v53, 0.0  ;;  %v1398_v25 = vmul.f32 0.01, %v1323_v53  ;;  %v2024_v26 = vpop.f32.mrb[30].mxu0 }
 0x580   :  { %1704 = vst [vmem:[#allocation5 + $0x8] sm:$0xff] %v1483_v12  ;;  %v1432_v3 = vsel %vm1368_vm11, %v2023_v24, %v1400_v38  ;;  %vm1369_vm13 = vcmp.ge.f32.partialorder %v2024_v26, 0.0  ;;  %v1401_v60 = vmul.f32 0.01, %v2024_v26  ;;  %v1326_v8 = vpop.f32.mrb[31].mxu0  ;;  %v1490_v0 = vpack.c.bf16 %v1483_v12, %v1482_v13 }
 0x581   :  { %v1480_v51 = vmul.f32 0.2, %v1432_v3  ;;  %v1430_v55 = vsel %vm1366_vm12, %v1323_v53, %v1398_v25  ;;  %vm1367_vm2 = vcmp.ge.f32.partialorder %v1326_v8, 0.0  ;;  %v1399_v52 = vmul.f32 0.01, %v1326_v8 }
 0x582   :  { %v1478_v21 = vmul.f32 0.2, %v1430_v55  ;;  %v1433_v4 = vsel %vm1369_vm13, %v2024_v26, %v1401_v60  ;;  %2041 = vmatprep.mubr.bf16.mxu0 %v1490_v0 }
 0x583   :  { %v1488_v58 = vadd.f32 %v1480_v51, %v1472_v16  ;;  %v1481_v63 = vmul.f32 0.2, %v1433_v4  ;;  %v1431_v22 = vsel %vm1367_vm2, %v1326_v8, %v1399_v52  ;;  %2042 = vmatmul.mubr.bf16.vlgmr.msra.gmra.mrb[32].mxu0 %v1491_v30 }
 0x584   :  { %v1486_v28 = vadd.f32 %v1478_v21, %v1470_v6  ;;  %v1479_v2 = vmul.f32 0.2, %v1431_v22 }
 0x585   :  { %1709 = vst [vmem:[#allocation5 + $0x30] sm:$0xff] %v1488_v58  ;;  %v1489_v46 = vadd.f32 %v1481_v63, %v1473_v7 }
 0x586   :  { %1707 = vst [vmem:[#allocation5 + $0x20] sm:$0xff] %v1486_v28  ;;  %v1487_v11 = vadd.f32 %v1479_v2, %v1471_v27 }
 0x587   :  { %1710 = vst [vmem:[#allocation5 + $0x38] sm:$0xff] %v1489_v46  ;;  %v1493_v47 = vpack.c.bf16 %v1489_v46, %v1488_v58 }
 0x588   :  { %1708 = vst [vmem:[#allocation5 + $0x28] sm:$0xff] %v1487_v11  ;;  %v1492_v50 = vpack.c.bf16 %v1487_v11, %v1486_v28 }
 0x58a   :  { %2045 = vmatprep.mubr.bf16.mxu0 %v1492_v50 }
 0x58b   :  { %2046 = vmatmul.mubr.bf16.gmra.mrb[36].mxu0 %v1493_v47 }
 0x58c   :  { %2171 = shalt.err (!%p2168_p9)
}
 0x58d   :  { %s2172_s29 = scalar_lea.hbm %s2960_s9, 1024 }
 0x58e   :  { %p2173_p10 = scmp.ne.s32.totalorder %s2960_s9, %s2172_s29  ;;  %p2176_p11 = scmp.lt.u32.totalorder %s2172_s29, %s2960_s9 }
 0x590   :  { %p2178_p12 = pnand %p2176_p11, %p2173_p10 }
 0x592   :  { %2181 = shalt.err (!%p2178_p12)
}
 0x593   :  { %s2216_s14 = smov 128   ;;  %s2217_s15 = smov 8   ;;  %v1657_v16 = vmul.f32 0.2, %v2468_v36  ;;  %v1655_v6 = vmul.f32 0.2, %v2459_v32 }
 0x594   :  { %1730 = dma.vmem_to_hbm [thread:$0]  %s1725_s26, 1024, %s2960_s9, [#allocation3], %s2216_s14, %s2216_s14, %s2217_s15   ;;  %v1656_v7 = vmul.f32 0.2, %v2456_v31  ;;  %v1658_v42 = vmul.f32 0.2, %v2471_v15 }
 0x595   :  { %v2911_v43 = vmul.f32 0.2, %v2474_v14  ;;  %v2914_v45 = vmul.f32 0.2, %v2477_v37  ;;  %v1661_v36 = vmul.f32 0.2, %v2487_v17 }
 0x596   :  { %v1672_v32 = vmul.f32 0.2, %v2773_v9  ;;  %v1671_v59 = vmul.f32 0.2, %v2776_v10  ;;  %v1673_v37 = vmul.f32 0.2, %v2781_v35 }
 0x597   :  { %v1674_v38 = vmul.f32 0.2, %v2784_v29  ;;  %v1687_v9 = vmul.f32 0.3, %v2829_v62  ;;  %v1688_v25 = vmul.f32 0.3, %v2834_v1 }
 0x598   :  { %v1689_v60 = vmul.f32 0.3, %v2846_v20  ;;  %v1690_v8 = vmul.f32 0.3, %v2851_v23  ;;  %s2218_s9 = smov [#allocation6]  }
 0x599   :  { %s1736_s18 = sshll.u32 %s2218_s9, 4  ;;  %s1737_s18 = int_to_ptr.vmem [resolvable:$true] %s1736_s18 }
 0x59a   :  { %s2182_s1 = scalar_lea.vmem %s1737_s18, 1024  ;;  %p2187_p0 = scmp.lt.s32.totalorder %s1737_s18, %s1737_s18 }
 0x59b   :  { %p2183_p13 = scmp.ne.s32.totalorder %s1737_s18, %s2182_s1  ;;  %p2188_p1 = scmp.lt.s32.totalorder %s2182_s1, %s2182_s1 }
 0x59d   :  { %p2189_p2 = por %p2188_p1, %p2187_p0 }
 0x59f   :  { %p2190_p3 = pnand %p2189_p2, %p2183_p13 }
 0x656   :  { %v2043_v27 = vpop.f32.mrb[32].mxu0 }
 0x657   :  { %vm1625_vm8 = vcmp.ge.f32.partialorder %v2043_v27, 0.0  ;;  %v1633_v33 = vmul.f32 0.01, %v2043_v27  ;;  %v1592_v61 = vpop.f32.mrb[33].mxu0 }
 0x658   :  { %vm1623_vm3 = vcmp.ge.f32.partialorder %v1592_v61, 0.0  ;;  %v1631_v56 = vmul.f32 0.01, %v1592_v61  ;;  %v2044_v48 = vpop.f32.mrb[34].mxu0 }
 0x659   :  { %v1641_v31 = vsel %vm1625_vm8, %v2043_v27, %v1633_v33  ;;  %vm1626_vm5 = vcmp.ge.f32.partialorder %v2044_v48, 0.0  ;;  %v1634_v57 = vmul.f32 0.01, %v2044_v48  ;;  %v1595_v15 = vpop.f32.mrb[35].mxu0  ;;  %v1662_v27 = vmul.f32 0.2, %v2490_v18 }
 0x65a   :  { %v1649_v13 = vmul.f32 0.3, %v1641_v31  ;;  %v1639_v14 = vsel %vm1623_vm3, %v1592_v61, %v1631_v56  ;;  %vm1624_vm14 = vcmp.ge.f32.partialorder %v1595_v15, 0.0  ;;  %v1632_v5 = vmul.f32 0.01, %v1595_v15 }
 0x65b   :  { %v1647_v24 = vmul.f32 0.3, %v1639_v14  ;;  %v1642_v12 = vsel %vm1626_vm5, %v2044_v48, %v1634_v57  ;;  %v1693_v48 = vmul.f32 0.3, %v2871_v49  ;;  %v1678_v57 = vmul.f32 0.2, %v2800_v44 }
 0x65c   :  { %v1665_v53 = vadd.f32 %v1657_v16, %v1649_v13  ;;  %v1650_v17 = vmul.f32 0.3, %v1642_v12  ;;  %v1640_v30 = vsel %vm1624_vm14, %v1595_v15, %v1632_v5  ;;  %v1677_v16 = vmul.f32 0.2, %v2797_v41 }
 0x65d   :  { %v1663_v26 = vadd.f32 %v1655_v6, %v1647_v24  ;;  %v1648_v3 = vmul.f32 0.3, %v1640_v30  ;;  %v1691_v41 = vmul.f32 0.3, %v2856_v34  ;;  %v1676_v13 = vmul.f32 0.2, %v2792_v19 }
 0x65e   :  { %v1681_v10 = vadd.f32 %v1673_v37, %v1665_v53  ;;  %v1666_v0 = vadd.f32 %v1658_v42, %v1650_v17  ;;  %v2047_v35 = vpop.f32.mrb[36].mxu0  ;;  %v1675_v42 = vmul.f32 0.2, %v2789_v40  ;;  %v1694_v14 = vmul.f32 0.3, %v2876_v54 }
 0x65f   :  { %v1679_v51 = vadd.f32 %v1671_v59, %v1663_v26  ;;  %v1664_v55 = vadd.f32 %v1656_v7, %v1648_v3  ;;  %vm1629_vm15 = vcmp.ge.f32.partialorder %v2047_v35, 0.0  ;;  %v1637_v29 = vmul.f32 0.01, %v2047_v35  ;;  %v1608_v52 = vpop.f32.mrb[37].mxu0 }
 0x660   :  { %v1697_v21 = vadd.f32 %v1689_v60, %v1681_v10  ;;  %v1682_v4 = vadd.f32 %v1674_v38, %v1666_v0  ;;  %vm1627_vm0 = vcmp.ge.f32.partialorder %v1608_v52, 0.0  ;;  %v1635_v62 = vmul.f32 0.01, %v1608_v52  ;;  %v2048_v58 = vpop.f32.mrb[38].mxu0 }
 0x661   :  { %v1695_v1 = vadd.f32 %v1687_v9, %v1679_v51  ;;  %v1680_v63 = vadd.f32 %v1672_v32, %v1664_v55  ;;  %v1645_v22 = vsel %vm1629_vm15, %v2047_v35, %v1637_v29  ;;  %vm1630_vm1 = vcmp.ge.f32.partialorder %v2048_v58, 0.0  ;;  %v1611_v20 = vpop.f32.mrb[39].mxu0 }
 0x662   :  { %1713 = vst [vmem:[#allocation6 + $0x10] sm:$0xff] %v1697_v21  ;;  %v1698_v23 = vadd.f32 %v1690_v8, %v1682_v4  ;;  %v1653_v28 = vmul.f32 0.3, %v1645_v22  ;;  %v1643_v2 = vsel %vm1627_vm0, %v1608_v52, %v1635_v62  ;;  %v1638_v46 = vmul.f32 0.01, %v2048_v58 }
 0x663   :  { %1711 = vst [vmem:[#allocation6] sm:$0xff] %v1695_v1  ;;  %v1696_v11 = vadd.f32 %v1688_v25, %v1680_v63  ;;  %v1651_v47 = vmul.f32 0.3, %v1643_v2  ;;  %vm1628_vm4 = vcmp.ge.f32.partialorder %v1611_v20, 0.0  ;;  %v1636_v50 = vmul.f32 0.01, %v1611_v20 }
 0x664   :  { %1714 = vst [vmem:[#allocation6 + $0x18] sm:$0xff] %v1698_v23  ;;  %v1669_v6 = vadd.f32 %v1661_v36, %v1653_v28  ;;  %v1646_v7 = vsel %vm1630_vm1, %v2048_v58, %v1638_v46  ;;  %v1692_v49 = vmul.f32 0.3, %v2861_v39 }
 0x665   :  { %1712 = vst [vmem:[#allocation6 + $0x8] sm:$0xff] %v1696_v11  ;;  %v1667_v33 = vadd.f32 %v2911_v43, %v1651_v47  ;;  %v1654_v61 = vmul.f32 0.3, %v1646_v7  ;;  %v1644_v56 = vsel %vm1628_vm4, %v1611_v20, %v1636_v50 }
 0x666   :  { %v1685_v32 = vadd.f32 %v1677_v16, %v1669_v6  ;;  %v1652_v31 = vmul.f32 0.3, %v1644_v56 }
 0x667   :  { %v1683_v15 = vadd.f32 %v1675_v42, %v1667_v33  ;;  %v1670_v36 = vadd.f32 %v1662_v27, %v1654_v61 }
 0x668   :  { %v1701_v18 = vadd.f32 %v1693_v48, %v1685_v32  ;;  %v1668_v40 = vadd.f32 %v2914_v45, %v1652_v31 }
 0x669   :  { %v1699_v43 = vadd.f32 %v1691_v41, %v1683_v15  ;;  %v1686_v5 = vadd.f32 %v1678_v57, %v1670_v36 }
 0x66a   :  { %1717 = vst [vmem:[#allocation6 + $0x30] sm:$0xff] %v1701_v18  ;;  %v1684_v59 = vadd.f32 %v1676_v13, %v1668_v40 }
 0x66b   :  { %1715 = vst [vmem:[#allocation6 + $0x20] sm:$0xff] %v1699_v43  ;;  %v1702_v44 = vadd.f32 %v1694_v14, %v1686_v5 }
 0x66c   :  { %v1700_v34 = vadd.f32 %v1692_v49, %v1684_v59 }
 0x66d   :  { %1718 = vst [vmem:[#allocation6 + $0x38] sm:$0xff] %v1702_v44 }
 0x66e   :  { %1716 = vst [vmem:[#allocation6 + $0x28] sm:$0xff] %v1700_v34 }
 0x66f   :  { %2193 = shalt.err (!%p2190_p3)
}
 0x670   :  { %s2194_s20 = scalar_lea.hbm %s2961_s10, 1024 }
 0x671   :  { %p2195_p4 = scmp.ne.s32.totalorder %s2961_s10, %s2194_s20  ;;  %p2198_p5 = scmp.lt.u32.totalorder %s2194_s20, %s2961_s10 }
 0x673   :  { %p2200_p6 = pnand %p2198_p5, %p2195_p4 }
 0x675   :  { %2203 = shalt.err (!%p2200_p6)
}
 0x676   :  { %1742 = dma.vmem_to_hbm [thread:$0]  %s1737_s18, 1024, %s2961_s10, [#allocation7], %s2216_s14, %s2216_s14, %s2217_s15  }
 0x677   :  { %2206 = dma.done.wait [#allocation3], 1024  }
 0x678   :  { %2207 = vsyncadd [#allocation3], 4294966272 }
 0x679   :  { %2208 = dma.done.wait [#allocation7], 1024  }
 0x67a   :  { %2209 = vsyncadd [#allocation7], 4294966272 }
 0x67b   :  { %1749 = vsyncpa [#allocation3], 1 }
 0x67c   :  { %1750 = vsyncpa [#allocation7], 1 }
 0x67d   :  { %1751 = vsyncpa [#allocation4], 1 }

</bundles_post_ra>
